<compile_context>
chip_gen: v7x
topology: tpu7x:2x2x1
jax: 0.10.0
libtpu: 0.0.40
codegen_flags: <defaults>
</compile_context>

<pallas_src>
import jax
import jax.numpy as jnp
from jax import lax
from jax.experimental import pallas as pl
from jax.experimental.pallas import tpu as pltpu


_EPS = 1e-5


def ann_kernel(x_ref,
               w1_ref, g1_ref, be1_ref,
               w2_ref, g2_ref, be2_ref,
               w3_ref, g3_ref, be3_ref,
               w4_ref, b4_ref,
               o_ref):
    B = x_ref.shape[0]
    inv_b = jnp.float32(1.0 / B)

    def bn_relu(h, gamma, beta):
        # Batch stats via f32 VALU/XLU axis-0 sums (explicit f32; avoids the multi-pass
        # decomposition an f32 operand dot would take on the bf16-native MXU).
        s1 = jnp.sum(h, axis=0, keepdims=True)          # (1, F)
        s2 = jnp.sum(h * h, axis=0, keepdims=True)      # (1, F)
        mean = s1 * inv_b
        var = jnp.maximum(s2 * inv_b - mean * mean, 0.0)  # biased batch var, clamped
        scale = gamma * lax.rsqrt(var + _EPS)
        shift = beta - mean * scale
        h = jnp.maximum(h * scale + shift, 0.0)           # fused affine + ReLU (f32)
        return h.astype(jnp.bfloat16)                     # bf16 only at MXU boundary

    # Layer 1: Linear(32 -> 256) + BN + ReLU   (pre-BN bias cancelled by batch-mean subtraction)
    h = jnp.dot(x_ref[...], w1_ref[...], preferred_element_type=jnp.float32)
    h = bn_relu(h, g1_ref[...], be1_ref[...])

    # Layer 2: Linear(256 -> 128) + BN + ReLU
    h = jnp.dot(h, w2_ref[...], preferred_element_type=jnp.float32)
    h = bn_relu(h, g2_ref[...], be2_ref[...])

    # Layer 3: Linear(128 -> 64, padded to 128 lanes) + BN + ReLU
    h = jnp.dot(h, w3_ref[...], preferred_element_type=jnp.float32)
    h = bn_relu(h, g3_ref[...], be3_ref[...])

    # Layer 4: Linear(128-padded -> 128-padded) + Sigmoid; lane-dense store, wrapper slices.
    logits = jnp.dot(h, w4_ref[...], preferred_element_type=jnp.float32) + b4_ref[...]
    o_ref[...] = 0.5 * jnp.tanh(0.5 * logits) + 0.5      # exact sigmoid, one EUP push


def prepare_params(params):
    """One-time preprocessing: pad layer-3/4 to 128 lanes, cast matmul weights to bf16."""
    h3 = params["w3"].shape[1]                 # 64
    out_dim = params["w4"].shape[1]            # 29
    h3p = ((h3 + 127) // 128) * 128            # 128
    outp = ((out_dim + 127) // 128) * 128      # 128

    w3p = jnp.pad(params["w3"], ((0, 0), (0, h3p - h3)))
    g3p = jnp.pad(params["g3"], ((0, 0), (0, h3p - h3)), constant_values=1.0)
    be3p = jnp.pad(params["be3"], ((0, 0), (0, h3p - h3)))
    w4p = jnp.pad(params["w4"], ((0, h3p - h3), (0, outp - out_dim)))
    b4p = jnp.pad(params["b4"], ((0, 0), (0, outp - out_dim)))

    bf16 = lambda w: w.astype(jnp.bfloat16)    # MXU-native, half the weight DMA bytes
    return dict(
        w1=bf16(params["w1"]), g1=params["g1"], be1=params["be1"],
        w2=bf16(params["w2"]), g2=params["g2"], be2=params["be2"],
        w3=bf16(w3p), g3=g3p, be3=be3p,
        w4=bf16(w4p), b4=b4p,
    )


def ann_forward(x, prep, out_dim=29):
    """x: (G, B, input_dim) or (B, input_dim), f32.  Each group of B rows is an
    independent training-mode BN batch (== running the PyTorch module once per group)."""
    squeeze = x.ndim == 2
    if squeeze:
        x = x[None]
    G, B, D = x.shape
    out_pad = prep["w4"].shape[1]

    x_bf = x.astype(jnp.bfloat16)              # kernel casts before the first matmul anyway

    weight_args = (
        prep["w1"], prep["g1"], prep["be1"],
        prep["w2"], prep["g2"], prep["be2"],
        prep["w3"], prep["g3"], prep["be3"],
        prep["w4"], prep["b4"],
    )
    # Constant index_map -> weights / BN params DMA'd once, VMEM-resident across steps.
    const_spec = lambda arr: pl.BlockSpec(arr.shape, lambda g: (0, 0))

    out = pl.pallas_call(
        ann_kernel,
        out_shape=jax.ShapeDtypeStruct((G, B, out_pad), jnp.float32),
        grid=(G,),
        in_specs=[pl.BlockSpec((None, B, D), lambda g: (g, 0, 0))]
                 + [const_spec(a) for a in weight_args],
        out_specs=pl.BlockSpec((None, B, out_pad), lambda g: (g, 0, 0)),
        compiler_params=pltpu.CompilerParams(
            dimension_semantics=("parallel",)),   # dual-TC split on v7x
    )(x_bf, *weight_args)

    out = out[..., :out_dim]
    return out[0] if squeeze else out


def init_params(key, input_dim=32, output_dim=29):
    dims = [input_dim, 256, 128, 64, output_dim]
    params = {}
    keys = jax.random.split(key, 16)
    k = 0
    for li, (din, dout) in enumerate(zip(dims[:-1], dims[1:]), start=1):
        bound = 1.0 / (din ** 0.5)   # PyTorch-Linear-style uniform init
        params[f"w{li}"] = jax.random.uniform(
            keys[k], (din, dout), jnp.float32, -bound, bound); k += 1
        params[f"b{li}"] = jax.random.uniform(
            keys[k], (1, dout), jnp.float32, -bound, bound); k += 1
        if li < 4:   # BatchNorm affine params for the first 3 layers
            params[f"g{li}"] = jnp.ones((1, dout), jnp.float32)
            params[f"be{li}"] = jnp.zeros((1, dout), jnp.float32)
    return params


def ann_reference(x, params):
    """Pure-f32 reference with exact PyTorch semantics (biases included, two-pass BN)."""
    def bn_relu(h, g, b):
        return jnp.maximum((h - h.mean(0)) * lax.rsqrt(h.var(0) + _EPS) * g + b, 0.0)
    h = bn_relu(x @ params["w1"] + params["b1"], params["g1"], params["be1"])
    h = bn_relu(h @ params["w2"] + params["b2"], params["g2"], params["be2"])
    h = bn_relu(h @ params["w3"] + params["b3"], params["g3"], params["be3"])
    return jax.nn.sigmoid(h @ params["w4"] + params["b4"])


def ann_reference_bf16(x, params):
    """Reference emulating the kernel's bf16 matmul inputs (tighter check)."""
    c = lambda a: a.astype(jnp.bfloat16)
    def bn_relu(h, g, b):
        return jnp.maximum((h - h.mean(0)) * lax.rsqrt(h.var(0) + _EPS) * g + b, 0.0)
    h = jnp.dot(c(x), c(params["w1"]), preferred_element_type=jnp.float32)
    h = bn_relu(h, params["g1"], params["be1"])
    h = jnp.dot(c(h), c(params["w2"]), preferred_element_type=jnp.float32)
    h = bn_relu(h, params["g2"], params["be2"])
    h = jnp.dot(c(h), c(params["w3"]), preferred_element_type=jnp.float32)
    h = bn_relu(h, params["g3"], params["be3"])
    logits = jnp.dot(c(h), c(params["w4"]), preferred_element_type=jnp.float32) + params["b4"]
    return jax.nn.sigmoid(logits)


if __name__ == "__main__":
    key = jax.random.PRNGKey(0)
    kx, kp = jax.random.split(key)

    # 4 independent batches of 128 (B=128 fills f32 sublanes / v5e MXU rows; use
    # multiples of 256 per batch on v6e/v7x for full MXU row fill in real workloads).
    G, B, input_dim, output_dim = 4, 128, 32, 29
    x = jax.random.normal(kx, (G, B, input_dim), jnp.float32)

    params = init_params(kp, input_dim=input_dim, output_dim=output_dim)
    prep = prepare_params(params)   # padding + bf16 casts done once, outside the forward

    fwd = jax.jit(ann_forward, static_argnames=("out_dim",))
    out = jax.block_until_ready(fwd(x, prep, out_dim=output_dim))
    assert out.shape == (G, B, output_dim)
    assert bool(jnp.all(jnp.isfinite(out)))

    ref_bf16 = jax.vmap(lambda xg: ann_reference_bf16(xg, params))(x)
    ref_f32 = jax.vmap(lambda xg: ann_reference(xg, params))(x)
    err_bf16 = float(jnp.max(jnp.abs(out - ref_bf16)))
    err_f32 = float(jnp.max(jnp.abs(out - ref_f32)))
    assert err_bf16 < 1e-2, f"mismatch vs bf16-emulating reference: {err_bf16}"
    assert err_f32 < 5e-2, f"mismatch vs f32 reference: {err_f32}"

    print("KERNEL_OK")
</pallas_src>

<mosaic_0001>
module attributes {stable_mosaic.version = 11 : i64} {
  func.func @ann_kernel(%arg0: i32, %arg1: memref<1x128x32xbf16, #tpu.memory_space<vmem>>, %arg2: memref<32x256xbf16, #tpu.memory_space<vmem>>, %arg3: memref<1x256xf32, #tpu.memory_space<vmem>>, %arg4: memref<1x256xf32, #tpu.memory_space<vmem>>, %arg5: memref<256x128xbf16, #tpu.memory_space<vmem>>, %arg6: memref<1x128xf32, #tpu.memory_space<vmem>>, %arg7: memref<1x128xf32, #tpu.memory_space<vmem>>, %arg8: memref<128x128xbf16, #tpu.memory_space<vmem>>, %arg9: memref<1x128xf32, #tpu.memory_space<vmem>>, %arg10: memref<1x128xf32, #tpu.memory_space<vmem>>, %arg11: memref<128x128xbf16, #tpu.memory_space<vmem>>, %arg12: memref<1x128xf32, #tpu.memory_space<vmem>>, %arg13: memref<1x128x128xf32, #tpu.memory_space<vmem>>) attributes {dimension_semantics = [#tpu.dimension_semantics<parallel>], iteration_bounds = array<i64: 4>, scalar_prefetch = 0 : i64, scratch_operands = 0 : i64, tpu.core_type = #tpu.core_type<tc>, window_params = [{transform_indices = @transform_0, window_bounds = array<i64: 1, 128, 32>}, {pipeline_mode = #tpu.pipeline_mode<synchronous>, transform_indices = @transform_1, window_bounds = array<i64: 32, 256>}, {pipeline_mode = #tpu.pipeline_mode<synchronous>, transform_indices = @transform_2, window_bounds = array<i64: 1, 256>}, {pipeline_mode = #tpu.pipeline_mode<synchronous>, transform_indices = @transform_3, window_bounds = array<i64: 1, 256>}, {pipeline_mode = #tpu.pipeline_mode<synchronous>, transform_indices = @transform_4, window_bounds = array<i64: 256, 128>}, {pipeline_mode = #tpu.pipeline_mode<synchronous>, transform_indices = @transform_5, window_bounds = array<i64: 1, 128>}, {pipeline_mode = #tpu.pipeline_mode<synchronous>, transform_indices = @transform_6, window_bounds = array<i64: 1, 128>}, {pipeline_mode = #tpu.pipeline_mode<synchronous>, transform_indices = @transform_7, window_bounds = array<i64: 128, 128>}, {pipeline_mode = #tpu.pipeline_mode<synchronous>, transform_indices = @transform_8, window_bounds = array<i64: 1, 128>}, {pipeline_mode = #tpu.pipeline_mode<synchronous>, transform_indices = @transform_9, window_bounds = array<i64: 1, 128>}, {pipeline_mode = #tpu.pipeline_mode<synchronous>, transform_indices = @transform_10, window_bounds = array<i64: 128, 128>}, {pipeline_mode = #tpu.pipeline_mode<synchronous>, transform_indices = @transform_11, window_bounds = array<i64: 1, 128>}, {transform_indices = @transform_12, window_bounds = array<i64: 1, 128, 128>}]} {
    %c0 = arith.constant 0 : index
    %c0_0 = arith.constant 0 : index
    %c0_1 = arith.constant 0 : index
    %0 = vector.load %arg1[%c0, %c0_0, %c0_1] : memref<1x128x32xbf16, #tpu.memory_space<vmem>>, vector<1x128x32xbf16>
    %1 = vector.shape_cast %0 : vector<1x128x32xbf16> to vector<128x32xbf16>
    %c0_2 = arith.constant 0 : index
    %c0_3 = arith.constant 0 : index
    %2 = vector.load %arg2[%c0_2, %c0_3] : memref<32x256xbf16, #tpu.memory_space<vmem>>, vector<32x256xbf16>
    %cst = arith.constant dense<0.000000e+00> : vector<128x256xf32>
    %3 = tpu.matmul %1, %2, %cst {dimension_numbers = #tpu.dot_dimension_numbers<[1], [0], [0], [1], [0, 0, 1, 1], [], []>} : vector<128x32xbf16>, vector<32x256xbf16>, vector<128x256xf32> -> vector<128x256xf32>
    %c0_4 = arith.constant 0 : index
    %c0_5 = arith.constant 0 : index
    %4 = vector.load %arg3[%c0_4, %c0_5] : memref<1x256xf32, #tpu.memory_space<vmem>>, vector<1x256xf32>
    %c0_6 = arith.constant 0 : index
    %c0_7 = arith.constant 0 : index
    %5 = vector.load %arg4[%c0_6, %c0_7] : memref<1x256xf32, #tpu.memory_space<vmem>>, vector<1x256xf32>
    %cst_8 = arith.constant dense<0.000000e+00> : vector<256xf32>
    %6 = vector.multi_reduction <add>, %3, %cst_8 [0] : vector<128x256xf32> to vector<256xf32>
    %7 = vector.shape_cast %6 : vector<256xf32> to vector<1x256xf32>
    %8 = arith.mulf %3, %3 : vector<128x256xf32>
    %cst_9 = arith.constant dense<0.000000e+00> : vector<256xf32>
    %9 = vector.multi_reduction <add>, %8, %cst_9 [0] : vector<128x256xf32> to vector<256xf32>
    %10 = vector.shape_cast %9 : vector<256xf32> to vector<1x256xf32>
    %cst_10 = arith.constant 7.812500e-03 : f32
    %11 = vector.broadcast %cst_10 : f32 to vector<1x256xf32>
    %12 = arith.mulf %7, %11 : vector<1x256xf32>
    %cst_11 = arith.constant 7.812500e-03 : f32
    %13 = vector.broadcast %cst_11 : f32 to vector<1x256xf32>
    %14 = arith.mulf %10, %13 : vector<1x256xf32>
    %15 = arith.mulf %12, %12 : vector<1x256xf32>
    %16 = arith.subf %14, %15 : vector<1x256xf32>
    %cst_12 = arith.constant 0.000000e+00 : f32
    %17 = vector.broadcast %cst_12 : f32 to vector<1x256xf32>
    %18 = arith.maximumf %16, %17 : vector<1x256xf32>
    %cst_13 = arith.constant 9.99999974E-6 : f32
    %19 = vector.broadcast %cst_13 : f32 to vector<1x256xf32>
    %20 = arith.addf %18, %19 : vector<1x256xf32>
    %21 = math.rsqrt %20 : vector<1x256xf32>
    %22 = arith.mulf %4, %21 : vector<1x256xf32>
    %23 = arith.mulf %12, %22 : vector<1x256xf32>
    %24 = arith.subf %5, %23 : vector<1x256xf32>
    %25 = vector.broadcast %22 : vector<1x256xf32> to vector<128x256xf32>
    %26 = arith.mulf %3, %25 : vector<128x256xf32>
    %27 = vector.broadcast %24 : vector<1x256xf32> to vector<128x256xf32>
    %28 = arith.addf %26, %27 : vector<128x256xf32>
    %cst_14 = arith.constant 0.000000e+00 : f32
    %29 = vector.broadcast %cst_14 : f32 to vector<128x256xf32>
    %30 = arith.maximumf %28, %29 : vector<128x256xf32>
    %31 = arith.truncf %30 : vector<128x256xf32> to vector<128x256xbf16>
    %c0_15 = arith.constant 0 : index
    %c0_16 = arith.constant 0 : index
    %32 = vector.load %arg5[%c0_15, %c0_16] : memref<256x128xbf16, #tpu.memory_space<vmem>>, vector<256x128xbf16>
    %cst_17 = arith.constant dense<0.000000e+00> : vector<128x128xf32>
    %33 = tpu.matmul %31, %32, %cst_17 {dimension_numbers = #tpu.dot_dimension_numbers<[1], [0], [0], [1], [0, 0, 1, 1], [], []>} : vector<128x256xbf16>, vector<256x128xbf16>, vector<128x128xf32> -> vector<128x128xf32>
    %c0_18 = arith.constant 0 : index
    %c0_19 = arith.constant 0 : index
    %34 = vector.load %arg6[%c0_18, %c0_19] : memref<1x128xf32, #tpu.memory_space<vmem>>, vector<1x128xf32>
    %c0_20 = arith.constant 0 : index
    %c0_21 = arith.constant 0 : index
    %35 = vector.load %arg7[%c0_20, %c0_21] : memref<1x128xf32, #tpu.memory_space<vmem>>, vector<1x128xf32>
    %cst_22 = arith.constant dense<0.000000e+00> : vector<128xf32>
    %36 = vector.multi_reduction <add>, %33, %cst_22 [0] : vector<128x128xf32> to vector<128xf32>
    %37 = vector.shape_cast %36 : vector<128xf32> to vector<1x128xf32>
    %38 = arith.mulf %33, %33 : vector<128x128xf32>
    %cst_23 = arith.constant dense<0.000000e+00> : vector<128xf32>
    %39 = vector.multi_reduction <add>, %38, %cst_23 [0] : vector<128x128xf32> to vector<128xf32>
    %40 = vector.shape_cast %39 : vector<128xf32> to vector<1x128xf32>
    %cst_24 = arith.constant 7.812500e-03 : f32
    %41 = vector.broadcast %cst_24 : f32 to vector<1x128xf32>
    %42 = arith.mulf %37, %41 : vector<1x128xf32>
    %cst_25 = arith.constant 7.812500e-03 : f32
    %43 = vector.broadcast %cst_25 : f32 to vector<1x128xf32>
    %44 = arith.mulf %40, %43 : vector<1x128xf32>
    %45 = arith.mulf %42, %42 : vector<1x128xf32>
    %46 = arith.subf %44, %45 : vector<1x128xf32>
    %cst_26 = arith.constant 0.000000e+00 : f32
    %47 = vector.broadcast %cst_26 : f32 to vector<1x128xf32>
    %48 = arith.maximumf %46, %47 : vector<1x128xf32>
    %cst_27 = arith.constant 9.99999974E-6 : f32
    %49 = vector.broadcast %cst_27 : f32 to vector<1x128xf32>
    %50 = arith.addf %48, %49 : vector<1x128xf32>
    %51 = math.rsqrt %50 : vector<1x128xf32>
    %52 = arith.mulf %34, %51 : vector<1x128xf32>
    %53 = arith.mulf %42, %52 : vector<1x128xf32>
    %54 = arith.subf %35, %53 : vector<1x128xf32>
    %55 = vector.broadcast %52 : vector<1x128xf32> to vector<128x128xf32>
    %56 = arith.mulf %33, %55 : vector<128x128xf32>
    %57 = vector.broadcast %54 : vector<1x128xf32> to vector<128x128xf32>
    %58 = arith.addf %56, %57 : vector<128x128xf32>
    %cst_28 = arith.constant 0.000000e+00 : f32
    %59 = vector.broadcast %cst_28 : f32 to vector<128x128xf32>
    %60 = arith.maximumf %58, %59 : vector<128x128xf32>
    %61 = arith.truncf %60 : vector<128x128xf32> to vector<128x128xbf16>
    %c0_29 = arith.constant 0 : index
    %c0_30 = arith.constant 0 : index
    %62 = vector.load %arg8[%c0_29, %c0_30] : memref<128x128xbf16, #tpu.memory_space<vmem>>, vector<128x128xbf16>
    %cst_31 = arith.constant dense<0.000000e+00> : vector<128x128xf32>
    %63 = tpu.matmul %61, %62, %cst_31 {dimension_numbers = #tpu.dot_dimension_numbers<[1], [0], [0], [1], [0, 0, 1, 1], [], []>} : vector<128x128xbf16>, vector<128x128xbf16>, vector<128x128xf32> -> vector<128x128xf32>
    %c0_32 = arith.constant 0 : index
    %c0_33 = arith.constant 0 : index
    %64 = vector.load %arg9[%c0_32, %c0_33] : memref<1x128xf32, #tpu.memory_space<vmem>>, vector<1x128xf32>
    %c0_34 = arith.constant 0 : index
    %c0_35 = arith.constant 0 : index
    %65 = vector.load %arg10[%c0_34, %c0_35] : memref<1x128xf32, #tpu.memory_space<vmem>>, vector<1x128xf32>
    %cst_36 = arith.constant dense<0.000000e+00> : vector<128xf32>
    %66 = vector.multi_reduction <add>, %63, %cst_36 [0] : vector<128x128xf32> to vector<128xf32>
    %67 = vector.shape_cast %66 : vector<128xf32> to vector<1x128xf32>
    %68 = arith.mulf %63, %63 : vector<128x128xf32>
    %cst_37 = arith.constant dense<0.000000e+00> : vector<128xf32>
    %69 = vector.multi_reduction <add>, %68, %cst_37 [0] : vector<128x128xf32> to vector<128xf32>
    %70 = vector.shape_cast %69 : vector<128xf32> to vector<1x128xf32>
    %cst_38 = arith.constant 7.812500e-03 : f32
    %71 = vector.broadcast %cst_38 : f32 to vector<1x128xf32>
    %72 = arith.mulf %67, %71 : vector<1x128xf32>
    %cst_39 = arith.constant 7.812500e-03 : f32
    %73 = vector.broadcast %cst_39 : f32 to vector<1x128xf32>
    %74 = arith.mulf %70, %73 : vector<1x128xf32>
    %75 = arith.mulf %72, %72 : vector<1x128xf32>
    %76 = arith.subf %74, %75 : vector<1x128xf32>
    %cst_40 = arith.constant 0.000000e+00 : f32
    %77 = vector.broadcast %cst_40 : f32 to vector<1x128xf32>
    %78 = arith.maximumf %76, %77 : vector<1x128xf32>
    %cst_41 = arith.constant 9.99999974E-6 : f32
    %79 = vector.broadcast %cst_41 : f32 to vector<1x128xf32>
    %80 = arith.addf %78, %79 : vector<1x128xf32>
    %81 = math.rsqrt %80 : vector<1x128xf32>
    %82 = arith.mulf %64, %81 : vector<1x128xf32>
    %83 = arith.mulf %72, %82 : vector<1x128xf32>
    %84 = arith.subf %65, %83 : vector<1x128xf32>
    %85 = vector.broadcast %82 : vector<1x128xf32> to vector<128x128xf32>
    %86 = arith.mulf %63, %85 : vector<128x128xf32>
    %87 = vector.broadcast %84 : vector<1x128xf32> to vector<128x128xf32>
    %88 = arith.addf %86, %87 : vector<128x128xf32>
    %cst_42 = arith.constant 0.000000e+00 : f32
    %89 = vector.broadcast %cst_42 : f32 to vector<128x128xf32>
    %90 = arith.maximumf %88, %89 : vector<128x128xf32>
    %91 = arith.truncf %90 : vector<128x128xf32> to vector<128x128xbf16>
    %c0_43 = arith.constant 0 : index
    %c0_44 = arith.constant 0 : index
    %92 = vector.load %arg11[%c0_43, %c0_44] : memref<128x128xbf16, #tpu.memory_space<vmem>>, vector<128x128xbf16>
    %cst_45 = arith.constant dense<0.000000e+00> : vector<128x128xf32>
    %93 = tpu.matmul %91, %92, %cst_45 {dimension_numbers = #tpu.dot_dimension_numbers<[1], [0], [0], [1], [0, 0, 1, 1], [], []>} : vector<128x128xbf16>, vector<128x128xbf16>, vector<128x128xf32> -> vector<128x128xf32>
    %c0_46 = arith.constant 0 : index
    %c0_47 = arith.constant 0 : index
    %94 = vector.load %arg12[%c0_46, %c0_47] : memref<1x128xf32, #tpu.memory_space<vmem>>, vector<1x128xf32>
    %95 = vector.broadcast %94 : vector<1x128xf32> to vector<128x128xf32>
    %96 = arith.addf %93, %95 : vector<128x128xf32>
    %cst_48 = arith.constant 5.000000e-01 : f32
    %97 = vector.broadcast %cst_48 : f32 to vector<128x128xf32>
    %98 = arith.mulf %97, %96 : vector<128x128xf32>
    %99 = math.tanh %98 : vector<128x128xf32>
    %cst_49 = arith.constant 5.000000e-01 : f32
    %100 = vector.broadcast %cst_49 : f32 to vector<128x128xf32>
    %101 = arith.mulf %100, %99 : vector<128x128xf32>
    %cst_50 = arith.constant 5.000000e-01 : f32
    %102 = vector.broadcast %cst_50 : f32 to vector<128x128xf32>
    %103 = arith.addf %101, %102 : vector<128x128xf32>
    %c0_51 = arith.constant 0 : index
    %c0_52 = arith.constant 0 : index
    %c0_53 = arith.constant 0 : index
    %104 = vector.load %arg13[%c0_51, %c0_52, %c0_53] : memref<1x128x128xf32, #tpu.memory_space<vmem>>, vector<1x128x128xf32>
    %105 = vector.shape_cast %104 : vector<1x128x128xf32> to vector<128x128xf32>
    %106 = vector.shape_cast %103 : vector<128x128xf32> to vector<1x128x128xf32>
    tpu.vector_store %arg13[%c0_51, %c0_52, %c0_53], %106 {strides = array<i32>} : memref<1x128x128xf32, #tpu.memory_space<vmem>>, vector<1x128x128xf32>,
    return
  }
  func.func @transform_0(%arg0: i32) -> (i32, i32, i32) {
    %c0_i32 = arith.constant 0 : i32
    %c0_i32_0 = arith.constant 0 : i32
    %c0_i32_1 = arith.constant 0 : i32
    return %arg0, %c0_i32, %c0_i32_0 : i32, i32, i32
  }
  func.func @transform_1(%arg0: i32) -> (i32, i32) {
    %c0_i32 = arith.constant 0 : i32
    %c0_i32_0 = arith.constant 0 : i32
    %c0_i32_1 = arith.constant 0 : i32
    return %c0_i32, %c0_i32_0 : i32, i32
  }
  func.func @transform_2(%arg0: i32) -> (i32, i32) {
    %c0_i32 = arith.constant 0 : i32
    %c0_i32_0 = arith.constant 0 : i32
    %c0_i32_1 = arith.constant 0 : i32
    return %c0_i32, %c0_i32_0 : i32, i32
  }
  func.func @transform_3(%arg0: i32) -> (i32, i32) {
    %c0_i32 = arith.constant 0 : i32
    %c0_i32_0 = arith.constant 0 : i32
    %c0_i32_1 = arith.constant 0 : i32
    return %c0_i32, %c0_i32_0 : i32, i32
  }
  func.func @transform_4(%arg0: i32) -> (i32, i32) {
    %c0_i32 = arith.constant 0 : i32
    %c0_i32_0 = arith.constant 0 : i32
    %c0_i32_1 = arith.constant 0 : i32
    return %c0_i32, %c0_i32_0 : i32, i32
  }
  func.func @transform_5(%arg0: i32) -> (i32, i32) {
    %c0_i32 = arith.constant 0 : i32
    %c0_i32_0 = arith.constant 0 : i32
    %c0_i32_1 = arith.constant 0 : i32
    return %c0_i32, %c0_i32_0 : i32, i32
  }
  func.func @transform_6(%arg0: i32) -> (i32, i32) {
    %c0_i32 = arith.constant 0 : i32
    %c0_i32_0 = arith.constant 0 : i32
    %c0_i32_1 = arith.constant 0 : i32
    return %c0_i32, %c0_i32_0 : i32, i32
  }
  func.func @transform_7(%arg0: i32) -> (i32, i32) {
    %c0_i32 = arith.constant 0 : i32
    %c0_i32_0 = arith.constant 0 : i32
    %c0_i32_1 = arith.constant 0 : i32
    return %c0_i32, %c0_i32_0 : i32, i32
  }
  func.func @transform_8(%arg0: i32) -> (i32, i32) {
    %c0_i32 = arith.constant 0 : i32
    %c0_i32_0 = arith.constant 0 : i32
    %c0_i32_1 = arith.constant 0 : i32
    return %c0_i32, %c0_i32_0 : i32, i32
  }
  func.func @transform_9(%arg0: i32) -> (i32, i32) {
    %c0_i32 = arith.constant 0 : i32
    %c0_i32_0 = arith.constant 0 : i32
    %c0_i32_1 = arith.constant 0 : i32
    return %c0_i32, %c0_i32_0 : i32, i32
  }
  func.func @transform_10(%arg0: i32) -> (i32, i32) {
    %c0_i32 = arith.constant 0 : i32
    %c0_i32_0 = arith.constant 0 : i32
    %c0_i32_1 = arith.constant 0 : i32
    return %c0_i32, %c0_i32_0 : i32, i32
  }
  func.func @transform_11(%arg0: i32) -> (i32, i32) {
    %c0_i32 = arith.constant 0 : i32
    %c0_i32_0 = arith.constant 0 : i32
    %c0_i32_1 = arith.constant 0 : i32
    return %c0_i32, %c0_i32_0 : i32, i32
  }
  func.func @transform_12(%arg0: i32) -> (i32, i32, i32) {
    %c0_i32 = arith.constant 0 : i32
    %c0_i32_0 = arith.constant 0 : i32
    %c0_i32_1 = arith.constant 0 : i32
    return %arg0, %c0_i32, %c0_i32_0 : i32, i32, i32
  }
}

</mosaic_0001>

<bundles_post_ra>
// kernel: ann_forward.1
= control target key start
LH: loop header
LB: loop body
LE: loop exit
PB: predicated region body
PF: predicated region fallthrough
CT: control target
= control target key end

     0   :  { %s2317_s21 = smov 0   ;;  %s2951_s0 = inlined_call_operand.vmem [shape: bf16[4,128,32], index: 0, kind: input, shape index: {}]   ;;  %s2952_s1 = inlined_call_operand.vmem [shape: bf16[32,256], index: 1, kind: input, shape index: {}]   ;;  %s2953_s2 = inlined_call_operand.vmem [shape: f32[1,256], index: 2, kind: input, shape index: {}]   ;;  %s2954_s3 = inlined_call_operand.vmem [shape: f32[1,256], index: 3, kind: input, shape index: {}]   ;;  %s2955_s4 = inlined_call_operand.vmem [shape: bf16[256,128], index: 4, kind: input, shape index: {}]   ;;  %s2956_s5 = inlined_call_operand.vmem [shape: f32[1,128], index: 5, kind: input, shape index: {}]   ;;  %s2957_s6 = inlined_call_operand.vmem [shape: f32[1,128], index: 6, kind: input, shape index: {}]   ;;  %s2958_s7 = inlined_call_operand.vmem [shape: bf16[128,128], index: 7, kind: input, shape index: {}]   ;;  %s2959_s8 = inlined_call_operand.vmem [shape: f32[1,128], index: 8, kind: input, shape index: {}]   ;;  %s2960_s9 = inlined_call_operand.vmem [shape: f32[1,128], index: 9, kind: input, shape index: {}]   ;;  %s2961_s10 = inlined_call_operand.vmem [shape: bf16[128,128], index: 10, kind: input, shape index: {}]   ;;  %s2962_s11 = inlined_call_operand.vmem [shape: f32[1,128], index: 11, kind: input, shape index: {}]   ;;  %s2963_s12 = inlined_call_operand.vmem [shape: f32[4,128,128], index: 12, kind: output, shape index: {}]  }
   0x1 LB: > { %s1904_s22 = sadd.s32 4294967295, %s2248_s21   ;;  %p1908_p0 = scmp.ge.s32.totalorder %s2248_s21, 1  ;;  %s2248_s21 = sphi %s2317_s21, %s22_s21  }
   0x2   : > { %p362_p1 = scmp.lt.s32.totalorder %s2248_s21, 5 }
   0x4   : > { %p363_p2 = pnand %p1908_p0, %p362_p1 }
   0x5   : > { %v2156_v0 = vld [vmem:[%s2952_s1 + $0x4] ss:$8 sps:$4 sm:$0xff] (!%p363_p2)   ;;  %p404_p3 = scmp.lt.s32.totalorder (!%p363_p2), %s1904_s22, 3  ;;  %v2158_v1 = vld [vmem:[%s2952_s1] ss:$8 sps:$4 sm:$0xff] (!%p363_p2)   ;;  %v2250_v2 = vmov (!%p363_p2), 0  }
   0x6   : > { %366 = sbr.rel (%p363_p2) target bundleno = 1220 (0x4c4), region = 68  ;;  %552 = vmatprep.mubr.bf16.mxu0 (!%p363_p2), %v2250_v2  ;;  %520 = vmatprep.subr.bf16.mxu0 (!%p363_p2), %v2156_v0  ;;  %v2159_v3 = vld [vmem:[%s2952_s1 + $0x14] ss:$8 sps:$4 sm:$0xff] (!%p363_p2)   ;;  %v2161_v4 = vld [vmem:[%s2952_s1 + $0x10] ss:$8 sps:$4 sm:$0xff] (!%p363_p2)   ;;  %vm495_vm0 = vcmask (!%p363_p2), 261120  }
   0x7   : > { %521 = vmatpush1.bf16.msra.mxu0 (!%p363_p2), %v2158_v1  ;;  %v2170_v13 = vld [vmem:[%s2955_s4 + $0x40] sm:$0xff] (!%p363_p2)   ;;  %v2172_v15 = vld [vmem:[%s2955_s4 + $0x48] sm:$0xff] (!%p363_p2)   ;;  %v2174_v17 = vld [vmem:[%s2955_s4 + $0x50] sm:$0xff] (!%p363_p2)  }
   0x8   : > { %522 = vmatprep.subr.bf16.mxu0 (!%p363_p2), %v2159_v3  ;;  %v2171_v14 = vld [vmem:[%s2955_s4] sm:$0xff] (!%p363_p2)   ;;  %1970 = vmatprep.subr.bf16.mxu1 (!%p363_p2), %v2170_v13  ;;  %v2173_v16 = vld [vmem:[%s2955_s4 + $0x8] sm:$0xff] (!%p363_p2)   ;;  %v2175_v18 = vld [vmem:[%s2955_s4 + $0x10] sm:$0xff] (!%p363_p2)  }
   0x9   : > { %1971 = vmatpush3.bf16.msra.mxu1 (!%p363_p2), %v2171_v14  ;;  %v2176_v19 = vld [vmem:[%s2955_s4 + $0x58] sm:$0xff] (!%p363_p2)   ;;  %v2178_v21 = vld [vmem:[%s2955_s4 + $0x60] sm:$0xff] (!%p363_p2)   ;;  %v2180_v23 = vld [vmem:[%s2955_s4 + $0x68] sm:$0xff] (!%p363_p2)  }
   0xa   : > { %1972 = vmatprep.subr.bf16.mxu1 (!%p363_p2), %v2172_v15  ;;  %v2177_v20 = vld [vmem:[%s2955_s4 + $0x18] sm:$0xff] (!%p363_p2)   ;;  %v2179_v22 = vld [vmem:[%s2955_s4 + $0x20] sm:$0xff] (!%p363_p2)   ;;  %v2181_v24 = vld [vmem:[%s2955_s4 + $0x28] sm:$0xff] (!%p363_p2)  }
   0xb   : > { %523 = vmatpush1.bf16.msra.mxu0 (!%p363_p2), %v2161_v4  ;;  %v2182_v25 = vld [vmem:[%s2955_s4 + $0x70] sm:$0xff] (!%p363_p2)   ;;  %v2184_v27 = vld [vmem:[%s2955_s4 + $0x78] sm:$0xff] (!%p363_p2)  }
   0xc   : > { %v2183_v26 = vld [vmem:[%s2955_s4 + $0x30] sm:$0xff] (!%p363_p2)   ;;  %v2185_v28 = vld [vmem:[%s2955_s4 + $0x38] sm:$0xff] (!%p363_p2)  }
   0xd   : > { %s2965_s22 = smov (!%p404_p3, %s1904_s22), 3  ;;  %1973 = vmatpush3.bf16.msra.mxu1 %v2173_v16 }
   0xe   : > { %s1968_s13 = sshll.u32 %s2965_s22, 6  ;;  %1974 = vmatprep.subr.bf16.mxu1 %v2174_v17  ;;  %s1969_s15 = sshll.u32 %s2965_s22, 7 }
   0xf   : > { %s408_s16 = scalar_lea.vmem %s2951_s0, %s1968_s13  ;;  %s2926_s18 = scalar_lea.vmem %s2963_s12, %s1969_s15 }
  0x10   : > { %v2162_v5 = vld [vmem:[%s408_s16] sm:$0xff]   ;;  %v2163_v6 = vld [vmem:[%s408_s16 + $0x8] sm:$0xff]   ;;  %v2164_v7 = vld [vmem:[%s408_s16 + $0x10] sm:$0xff]  }
  0x11   : > { %1925 = vmatmul.mubr.msk.bf16.vlgmr.msra.gmra.mrb[0].mxu0 %vm495_vm0, %v2162_v5  ;;  %v2165_v8 = vld [vmem:[%s408_s16 + $0x18] sm:$0xff]   ;;  %v2166_v9 = vld [vmem:[%s408_s16 + $0x20] sm:$0xff]   ;;  %v2167_v10 = vld [vmem:[%s408_s16 + $0x28] sm:$0xff]   ;;  %1975 = vmatpush3.bf16.msra.mxu1 %v2175_v18 }
  0x12   : > { %562 = vmatprep.mubr.bf16.mxu0 %v2250_v2  ;;  %v2168_v11 = vld [vmem:[%s408_s16 + $0x30] sm:$0xff]   ;;  %v2169_v12 = vld [vmem:[%s408_s16 + $0x38] sm:$0xff]   ;;  %1976 = vmatprep.subr.bf16.mxu1 %v2176_v19 }
  0x15   : > { %1977 = vmatpush3.bf16.msra.mxu1 %v2177_v20 }
  0x16   : > { %1978 = vmatprep.subr.bf16.mxu1 %v2178_v21 }
  0x19   : > { %1926 = vmatmul.mubr.msk.bf16.gmra.mrb[4].mxu0 %vm495_vm0, %v2163_v6  ;;  %1979 = vmatpush3.bf16.msra.mxu1 %v2179_v22 }
  0x1a   : > { %572 = vmatprep.mubr.bf16.mxu0 %v2250_v2  ;;  %1980 = vmatprep.subr.bf16.mxu1 %v2180_v23 }
  0x1d   : > { %1981 = vmatpush3.bf16.msra.mxu1 %v2181_v24 }
  0x1e   : > { %1982 = vmatprep.subr.bf16.mxu1 %v2182_v25 }
  0x21   : > { %1927 = vmatmul.mubr.msk.bf16.gmra.mrb[8].mxu0 %vm495_vm0, %v2164_v7  ;;  %1983 = vmatpush3.bf16.msra.mxu1 %v2183_v26 }
  0x22   : > { %582 = vmatprep.mubr.bf16.mxu0 %v2250_v2  ;;  %1984 = vmatprep.subr.bf16.mxu1 %v2184_v27 }
  0x25   : > { %1985 = vmatpush3.bf16.msra.mxu1 %v2185_v28 }
  0x29   : > { %1928 = vmatmul.mubr.msk.bf16.gmra.mrb[12].mxu0 %vm495_vm0, %v2165_v8 }
  0x2a   : > { %592 = vmatprep.mubr.bf16.mxu0 %v2250_v2 }
  0x31   : > { %1929 = vmatmul.mubr.msk.bf16.gmra.mrb[16].mxu0 %vm495_vm0, %v2166_v9 }
  0x32   : > { %602 = vmatprep.mubr.bf16.mxu0 %v2250_v2 }
  0x39   : > { %1930 = vmatmul.mubr.msk.bf16.gmra.mrb[20].mxu0 %vm495_vm0, %v2167_v10 }
  0x3a   : > { %612 = vmatprep.mubr.bf16.mxu0 %v2250_v2 }
  0x41   : > { %1931 = vmatmul.mubr.msk.bf16.gmra.mrb[24].mxu0 %vm495_vm0, %v2168_v11 }
  0x42   : > { %622 = vmatprep.mubr.bf16.mxu0 %v2250_v2 }
  0x49   : > { %1932 = vmatmul.mubr.msk.bf16.gmra.mrb[28].mxu0 %vm495_vm0, %v2169_v12 }
  0xe4   : > { %v2399_v29 = vpop.f32.mrb[0].mxu0 }
  0xe5   : > { %v2401_v30 = vpop.f32.mrb[1].mxu0  ;;  %v677_v32 = vmul.f32 %v2399_v29, %v2399_v29 }
  0xe6   : > { %v2403_v31 = vpop.f32.mrb[2].mxu0  ;;  %v678_v36 = vmul.f32 %v2401_v30, %v2401_v30 }
  0xe7   : > { %v635_v33 = vadd.f32 %v2403_v31, %v2399_v29  ;;  %v679_v34 = vmul.f32 %v2403_v31, %v2403_v31  ;;  %v2411_v35 = vpop.f32.mrb[3].mxu0 }
  0xe8   : > { %v656_v37 = vadd.f32 %v2411_v35, %v2401_v30  ;;  %v680_v38 = vmul.f32 %v2411_v35, %v2411_v35 }
  0xe9   : > { %v709_v39 = vadd.f32 %v679_v34, %v677_v32 }
  0xea   : > { %v730_v40 = vadd.f32 %v680_v38, %v678_v36 }
  0xec   : > { %v2419_v41 = vpop.f32.mrb[4].mxu0 }
  0xed   : > { %v636_v42 = vadd.f32 %v635_v33, %v2419_v41  ;;  %v681_v43 = vmul.f32 %v2419_v41, %v2419_v41  ;;  %v2424_v44 = vpop.f32.mrb[5].mxu0 }
  0xee   : > { %v657_v45 = vadd.f32 %v656_v37, %v2424_v44  ;;  %v682_v46 = vmul.f32 %v2424_v44, %v2424_v44  ;;  %v2429_v47 = vpop.f32.mrb[6].mxu0 }
  0xef   : > { %v710_v48 = vadd.f32 %v709_v39, %v681_v43  ;;  %v637_v49 = vadd.f32 %v636_v42, %v2429_v47  ;;  %v683_v50 = vmul.f32 %v2429_v47, %v2429_v47  ;;  %v2434_v51 = vpop.f32.mrb[7].mxu0 }
  0xf0   : > { %v731_v52 = vadd.f32 %v730_v40, %v682_v46  ;;  %v658_v53 = vadd.f32 %v657_v45, %v2434_v51  ;;  %v684_v54 = vmul.f32 %v2434_v51, %v2434_v51 }
  0xf1   : > { %v711_v55 = vadd.f32 %v710_v48, %v683_v50 }
  0xf2   : > { %v732_v56 = vadd.f32 %v731_v52, %v684_v54 }
  0xf4   : > { %v2439_v57 = vpop.f32.mrb[8].mxu0 }
  0xf5   : > { %v638_v58 = vadd.f32 %v637_v49, %v2439_v57  ;;  %v685_v59 = vmul.f32 %v2439_v57, %v2439_v57  ;;  %v2444_v60 = vpop.f32.mrb[9].mxu0 }
  0xf6   : > { %v659_v61 = vadd.f32 %v658_v53, %v2444_v60  ;;  %v686_v62 = vmul.f32 %v2444_v60, %v2444_v60  ;;  %v2449_v63 = vpop.f32.mrb[10].mxu0 }
  0xf7   : > { %v712_v0 = vadd.f32 %v711_v55, %v685_v59  ;;  %v639_v1 = vadd.f32 %v638_v58, %v2449_v63  ;;  %v687_v2 = vmul.f32 %v2449_v63, %v2449_v63  ;;  %v2454_v3 = vpop.f32.mrb[11].mxu0 }
  0xf8   : > { %v733_v4 = vadd.f32 %v732_v56, %v686_v62  ;;  %v660_v5 = vadd.f32 %v659_v61, %v2454_v3  ;;  %v688_v6 = vmul.f32 %v2454_v3, %v2454_v3 }
  0xf9   : > { %v713_v7 = vadd.f32 %v712_v0, %v687_v2 }
  0xfa   : > { %v734_v8 = vadd.f32 %v733_v4, %v688_v6 }
  0xfc   : > { %v2459_v9 = vpop.f32.mrb[12].mxu0 }
  0xfd   : > { %v640_v10 = vadd.f32 %v639_v1, %v2459_v9  ;;  %v689_v11 = vmul.f32 %v2459_v9, %v2459_v9  ;;  %v2464_v12 = vpop.f32.mrb[13].mxu0 }
  0xfe   : > { %v661_v13 = vadd.f32 %v660_v5, %v2464_v12  ;;  %v690_v14 = vmul.f32 %v2464_v12, %v2464_v12  ;;  %v2469_v15 = vpop.f32.mrb[14].mxu0 }
  0xff   : > { %v714_v16 = vadd.f32 %v713_v7, %v689_v11  ;;  %v641_v17 = vadd.f32 %v640_v10, %v2469_v15  ;;  %v691_v18 = vmul.f32 %v2469_v15, %v2469_v15  ;;  %v2474_v19 = vpop.f32.mrb[15].mxu0 }
 0x100   : > { %v735_v20 = vadd.f32 %v734_v8, %v690_v14  ;;  %v662_v21 = vadd.f32 %v661_v13, %v2474_v19  ;;  %v692_v22 = vmul.f32 %v2474_v19, %v2474_v19 }
 0x101   : > { %v715_v23 = vadd.f32 %v714_v16, %v691_v18 }
 0x102   : > { %v736_v24 = vadd.f32 %v735_v20, %v692_v22 }
 0x104   : > { %v2479_v25 = vpop.f32.mrb[16].mxu0 }
 0x105   : > { %v642_v26 = vadd.f32 %v641_v17, %v2479_v25  ;;  %v693_v27 = vmul.f32 %v2479_v25, %v2479_v25  ;;  %v2484_v28 = vpop.f32.mrb[17].mxu0 }
 0x106   : > { %v663_v32 = vadd.f32 %v662_v21, %v2484_v28  ;;  %v694_v33 = vmul.f32 %v2484_v28, %v2484_v28  ;;  %v2489_v34 = vpop.f32.mrb[18].mxu0 }
 0x107   : > { %v716_v36 = vadd.f32 %v715_v23, %v693_v27  ;;  %v643_v37 = vadd.f32 %v642_v26, %v2489_v34  ;;  %v695_v38 = vmul.f32 %v2489_v34, %v2489_v34  ;;  %v2494_v39 = vpop.f32.mrb[19].mxu0 }
 0x108   : > { %v737_v40 = vadd.f32 %v736_v24, %v694_v33  ;;  %v664_v42 = vadd.f32 %v663_v32, %v2494_v39  ;;  %v696_v43 = vmul.f32 %v2494_v39, %v2494_v39 }
 0x109   : > { %v717_v45 = vadd.f32 %v716_v36, %v695_v38 }
 0x10a   : > { %v738_v46 = vadd.f32 %v737_v40, %v696_v43 }
 0x10c   : > { %v2499_v48 = vpop.f32.mrb[20].mxu0 }
 0x10d   : > { %v644_v49 = vadd.f32 %v643_v37, %v2499_v48  ;;  %v697_v50 = vmul.f32 %v2499_v48, %v2499_v48  ;;  %v2504_v52 = vpop.f32.mrb[21].mxu0 }
 0x10e   : > { %v665_v53 = vadd.f32 %v664_v42, %v2504_v52  ;;  %v698_v54 = vmul.f32 %v2504_v52, %v2504_v52  ;;  %v2509_v55 = vpop.f32.mrb[22].mxu0 }
 0x10f   : > { %v718_v56 = vadd.f32 %v717_v45, %v697_v50  ;;  %v645_v58 = vadd.f32 %v644_v49, %v2509_v55  ;;  %v699_v59 = vmul.f32 %v2509_v55, %v2509_v55  ;;  %v2514_v61 = vpop.f32.mrb[23].mxu0 }
 0x110   : > { %v739_v62 = vadd.f32 %v738_v46, %v698_v54  ;;  %v666_v0 = vadd.f32 %v665_v53, %v2514_v61  ;;  %v700_v1 = vmul.f32 %v2514_v61, %v2514_v61 }
 0x111   : > { %v719_v2 = vadd.f32 %v718_v56, %v699_v59 }
 0x112   : > { %v740_v4 = vadd.f32 %v739_v62, %v700_v1 }
 0x114   : > { %v2519_v5 = vpop.f32.mrb[24].mxu0 }
 0x115   : > { %v646_v6 = vadd.f32 %v645_v58, %v2519_v5  ;;  %v701_v7 = vmul.f32 %v2519_v5, %v2519_v5  ;;  %v2524_v8 = vpop.f32.mrb[25].mxu0 }
 0x116   : > { %v667_v10 = vadd.f32 %v666_v0, %v2524_v8  ;;  %v702_v11 = vmul.f32 %v2524_v8, %v2524_v8  ;;  %v2529_v13 = vpop.f32.mrb[26].mxu0 }
 0x117   : > { %v720_v14 = vadd.f32 %v719_v2, %v701_v7  ;;  %v647_v16 = vadd.f32 %v646_v6, %v2529_v13  ;;  %v703_v17 = vmul.f32 %v2529_v13, %v2529_v13  ;;  %v2534_v18 = vpop.f32.mrb[27].mxu0 }
 0x118   : > { %v741_v20 = vadd.f32 %v740_v4, %v702_v11  ;;  %v668_v21 = vadd.f32 %v667_v10, %v2534_v18  ;;  %v704_v22 = vmul.f32 %v2534_v18, %v2534_v18 }
 0x119   : > { %v721_v23 = vadd.f32 %v720_v14, %v703_v17 }
 0x11a   : > { %v742_v24 = vadd.f32 %v741_v20, %v704_v22 }
 0x11c   : > { %v2539_v26 = vpop.f32.mrb[28].mxu0 }
 0x11d   : > { %v648_v27 = vadd.f32 %v647_v16, %v2539_v26  ;;  %v705_v32 = vmul.f32 %v2539_v26, %v2539_v26  ;;  %v2544_v33 = vpop.f32.mrb[29].mxu0 }
 0x11e   : > { %v669_v36 = vadd.f32 %v668_v21, %v2544_v33  ;;  %v706_v37 = vmul.f32 %v2544_v33, %v2544_v33  ;;  %v2549_v38 = vpop.f32.mrb[30].mxu0 }
 0x11f   : > { %v722_v40 = vadd.f32 %v721_v23, %v705_v32  ;;  %v649_v42 = vadd.f32 %v648_v27, %v2549_v38  ;;  %v707_v43 = vmul.f32 %v2549_v38, %v2549_v38  ;;  %v2554_v45 = vpop.f32.mrb[31].mxu0 }
 0x120   : > { %v743_v46 = vadd.f32 %v742_v24, %v706_v37  ;;  %v670_v49 = vadd.f32 %v669_v36, %v2554_v45  ;;  %v708_v50 = vmul.f32 %v2554_v45, %v2554_v45 }
 0x121   : > { %v650_v53 = vrot.slane %v649_v42, 4  ;;  %v723_v54 = vadd.f32 %v722_v40, %v707_v43 }
 0x122   : > { %v671_v56 = vrot.slane %v670_v49, 4  ;;  %v744_v58 = vadd.f32 %v743_v46, %v708_v50 }
 0x123   : > { %v651_v59 = vadd.f32 %v650_v53, %v649_v42  ;;  %v724_v62 = vrot.slane %v723_v54, 4 }
 0x124   : > { %v672_v0 = vadd.f32 %v671_v56, %v670_v49  ;;  %v745_v1 = vrot.slane %v744_v58, 4 }
 0x125   : > { %v652_v2 = vrot.slane %v651_v59, 2  ;;  %v725_v4 = vadd.f32 %v724_v62, %v723_v54 }
 0x126   : > { %v673_v6 = vrot.slane %v672_v0, 2  ;;  %v746_v7 = vadd.f32 %v745_v1, %v744_v58 }
 0x127   : > { %v653_v10 = vadd.f32 %v652_v2, %v651_v59  ;;  %v726_v11 = vrot.slane %v725_v4, 2  ;;  %v771_v2 = vlaneseq }
 0x128   : > { %v674_v14 = vadd.f32 %v673_v6, %v672_v0  ;;  %v747_v16 = vrot.slane %v746_v7, 2  ;;  %v2251_v0 = vmov 1966171168  }
 0x129   : > { %v654_v17 = vrot.slane %v653_v10, 1  ;;  %v727_v20 = vadd.f32 %v726_v11, %v725_v4  ;;  %v769_v1 = vunpack.c.l.s4 %v2251_v0  ;;  %v772_v6 = vshrl.u32 %v771_v2, 7 }
 0x12a   : > { %v675_v21 = vrot.slane %v674_v14, 1  ;;  %v748_v22 = vadd.f32 %v747_v16, %v746_v7 }
 0x12b   : > { %v655_v23 = vadd.f32 %v654_v17, %v653_v10  ;;  %v728_v24 = vrot.slane %v727_v20, 1  ;;  %v770_v4 = vunpack.c.0.s8 %v769_v1  ;;  %v633_v17 = vld [vmem:[%s2953_s2] sm:$0x3] }
 0x12c   : > { %v676_v27 = vadd.f32 %v675_v21, %v674_v14  ;;  %v749_v32 = vrot.slane %v748_v22, 1  ;;  %v2562_v21 = vsub.s32 0, %v772_v6 }
 0x12d   : > { %v729_v36 = vadd.f32 %v728_v24, %v727_v20  ;;  %v751_v37 = vmul.f32 0.0078125, %v655_v23  ;;  %v773_v10 = vsub.s32 %v770_v4, %v772_v6 }
 0x12e   : > { %v750_v40 = vadd.f32 %v749_v32, %v748_v22  ;;  %v752_v42 = vmul.f32 0.0078125, %v676_v27  ;;  %v791_v22 = vsub.s32 1, %v772_v6 }
 0x12f   : > { %v753_v43 = vmul.f32 0.0078125, %v729_v36  ;;  %v755_v46 = vmul.f32 %v751_v37, %v751_v37 }
 0x130   : > { %v754_v49 = vmul.f32 0.0078125, %v750_v40  ;;  %v756_v50 = vmul.f32 %v752_v42, %v752_v42 }
 0x131   : > { %v757_v53 = vsub.f32 %v753_v43, %v755_v46 }
 0x132   : > { %v758_v54 = vsub.f32 %v754_v49, %v756_v50 }
 0x133   : > { %v759_v56 = vmax.f32 %v757_v53, 0.0 }
 0x134   : > { %v760_v58 = vmax.f32 %v758_v54, 0.0 }
 0x135   : > { %v761_v59 = vadd.f32 1e-05, %v759_v56 }
 0x136   : > { %v762_v62 = vadd.f32 1e-05, %v760_v58 }
 0x137   : > { %2202 = vrsqrt.f32 %v761_v59 }
 0x138   : > { %2204 = vrsqrt.f32 %v762_v62 }
 0x141   : > { %v2203_v7 = vpop.eup %2202 }
 0x142   : > { %v2205_v11 = vpop.eup %2204 }
 0x143   : > { %v767_v14 = vcombine.low %v2203_v7, %v2205_v11 }
 0x145   : > { %v774_v16 = vrot.slane %v767_v14, %v773_v10 }
 0x147   : > { %v781_v20 = vrot.slane %v774_v16, %v773_v10 }
 0x149   : > { %v783_v23 = vmul.f32 %v781_v20, %v633_v17 }
 0x14b   : > { %v788_v24 = vrot.slane %v783_v23, %v2562_v21  ;;  %v792_v27 = vrot.slane %v783_v23, %v791_v22 }
 0x14d   : > { %v795_v32 = vmul.f32 %v788_v24, %v751_v37  ;;  %v796_v36 = vmul.f32 %v792_v27, %v752_v42  ;;  %v847_v40 = vmul.f32 %v792_v27, %v2554_v45  ;;  %v817_v43 = vmul.f32 %v792_v27, %v2401_v30 }
 0x14e   : > { %v819_v46 = vmul.f32 %v792_v27, %v2411_v35  ;;  %v816_v49 = vmul.f32 %v788_v24, %v2399_v29  ;;  %v818_v50 = vmul.f32 %v788_v24, %v2403_v31  ;;  %v821_v53 = vmul.f32 %v792_v27, %v2424_v44 }
 0x14f   : > { %v799_v54 = vcombine.low %v795_v32, %v796_v36  ;;  %v823_v56 = vmul.f32 %v792_v27, %v2434_v51  ;;  %v820_v58 = vmul.f32 %v788_v24, %v2419_v41  ;;  %v822_v37 = vmul.f32 %v788_v24, %v2429_v47  ;;  %v634_v41 = vld [vmem:[%s2954_s3] sm:$0x3] }
 0x150   : > { %v825_v42 = vmul.f32 %v792_v27, %v2444_v60  ;;  %v827_v45 = vmul.f32 %v792_v27, %v2454_v3  ;;  %v824_v30 = vmul.f32 %v788_v24, %v2439_v57  ;;  %v826_v35 = vmul.f32 %v788_v24, %v2449_v63 }
 0x151   : > { %v806_v29 = vrot.slane %v799_v54, %v773_v10  ;;  %v829_v31 = vmul.f32 %v792_v27, %v2464_v12  ;;  %v831_v44 = vmul.f32 %v792_v27, %v2474_v19  ;;  %v828_v59 = vmul.f32 %v788_v24, %v2459_v9 }
 0x152   : > { %v830_v47 = vmul.f32 %v788_v24, %v2469_v15  ;;  %v833_v51 = vmul.f32 %v792_v27, %v2484_v28  ;;  %v835_v60 = vmul.f32 %v792_v27, %v2494_v39  ;;  %v832_v57 = vmul.f32 %v788_v24, %v2479_v25 }
 0x153   : > { %v813_v63 = vrot.slane %v806_v29, %v773_v10  ;;  %v834_v3 = vmul.f32 %v788_v24, %v2489_v34  ;;  %v2590_v12 = vmul.f32 %v792_v27, %v2504_v52  ;;  %v2593_v9 = vmul.f32 %v792_v27, %v2514_v61 }
 0x154   : > { %v2596_v19 = vmul.f32 %v788_v24, %v2499_v48  ;;  %v2599_v15 = vmul.f32 %v788_v24, %v2509_v55  ;;  %v2602_v28 = vmul.f32 %v792_v27, %v2524_v8  ;;  %v2605_v25 = vmul.f32 %v792_v27, %v2534_v18 }
 0x155   : > { %v815_v39 = vsub.f32 %v634_v41, %v813_v63  ;;  %v2608_v34 = vmul.f32 %v788_v24, %v2519_v5  ;;  %v2611_v52 = vmul.f32 %v788_v24, %v2529_v13  ;;  %v2614_v61 = vmul.f32 %v792_v27, %v2544_v33 }
 0x156   : > { %v2617_v48 = vmul.f32 %v788_v24, %v2539_v26  ;;  %v2620_v55 = vmul.f32 %v788_v24, %v2549_v38 }
 0x157   : > { %v2623_v8 = vrot.slane %v815_v39, %v2562_v21  ;;  %v2625_v18 = vrot.slane %v815_v39, %v791_v22 }
 0x159   : > { %v2628_v5 = vadd.f32 %v2625_v18, %v847_v40  ;;  %v860_v13 = vadd.f32 %v2625_v18, %v817_v43  ;;  %v862_v62 = vadd.f32 %v2625_v18, %v819_v46  ;;  %v859_v33 = vadd.f32 %v2623_v8, %v816_v49 }
 0x15a   : > { %v861_v26 = vadd.f32 %v2623_v8, %v818_v50  ;;  %v864_v0 = vadd.f32 %v2625_v18, %v821_v53  ;;  %v866_v38 = vadd.f32 %v2625_v18, %v823_v56  ;;  %v863_v1 = vadd.f32 %v2623_v8, %v820_v58 }
 0x15b   : > { %v892_v2 = vmax.f32 %v860_v13, 0.0  ;;  %v894_v4 = vmax.f32 %v862_v62, 0.0  ;;  %v891_v6 = vmax.f32 %v859_v33, 0.0  ;;  %v865_v7 = vadd.f32 %v2623_v8, %v822_v37 }
 0x15c   : > { %v893_v10 = vmax.f32 %v861_v26, 0.0  ;;  %v896_v11 = vmax.f32 %v864_v0, 0.0  ;;  %v898_v14 = vmax.f32 %v866_v38, 0.0  ;;  %v895_v16 = vmax.f32 %v863_v1, 0.0 }
 0x15d   : > { %v924_v17 = vpack.c.bf16 %v894_v4, %v892_v2  ;;  %v897_v20 = vmax.f32 %v865_v7, 0.0  ;;  %v868_v22 = vadd.f32 %v2625_v18, %v825_v42  ;;  %v870_v23 = vadd.f32 %v2625_v18, %v827_v45 }
 0x15e   : > { %v923_v24 = vpack.c.bf16 %v893_v10, %v891_v6  ;;  %v926_v27 = vpack.c.bf16 %v898_v14, %v896_v11  ;;  %v867_v32 = vadd.f32 %v2623_v8, %v824_v30  ;;  %v869_v36 = vadd.f32 %v2623_v8, %v826_v35 }
 0x15f   : > { %1099 = vmatprep.mubr.bf16.mxu1 %v924_v17  ;;  %v925_v40 = vpack.c.bf16 %v897_v20, %v895_v16  ;;  %v900_v43 = vmax.f32 %v868_v22, 0.0  ;;  %v902_v46 = vmax.f32 %v870_v23, 0.0  ;;  %v872_v49 = vadd.f32 %v2625_v18, %v829_v31 }
 0x160   : > { %1100 = vmatmul.mubr.bf16.vlgmr.msra.gmra.mrb[0].mxu1 %v923_v24  ;;  %v899_v50 = vmax.f32 %v867_v32, 0.0  ;;  %v901_v53 = vmax.f32 %v869_v36, 0.0  ;;  %v874_v54 = vadd.f32 %v2625_v18, %v831_v44  ;;  %v871_v56 = vadd.f32 %v2623_v8, %v828_v59  ;;  %v2192_v36 = vld [vmem:[%s2958_s7 + $0x30] sm:$0xff]  }
 0x161   : > { %1107 = vmatprep.mubr.bf16.mxu1 %v926_v27  ;;  %v928_v58 = vpack.c.bf16 %v902_v46, %v900_v43  ;;  %v904_v37 = vmax.f32 %v872_v49, 0.0  ;;  %v873_v42 = vadd.f32 %v2623_v8, %v830_v47  ;;  %v876_v45 = vadd.f32 %v2625_v18, %v833_v51 }
 0x162   : > { %v927_v30 = vpack.c.bf16 %v901_v53, %v899_v50  ;;  %v906_v35 = vmax.f32 %v874_v54, 0.0  ;;  %v903_v29 = vmax.f32 %v871_v56, 0.0  ;;  %v878_v41 = vadd.f32 %v2625_v18, %v835_v60 }
 0x163   : > { %v905_v31 = vmax.f32 %v873_v42, 0.0  ;;  %v908_v63 = vmax.f32 %v876_v45, 0.0  ;;  %v875_v39 = vadd.f32 %v2623_v8, %v832_v57  ;;  %v877_v44 = vadd.f32 %v2623_v8, %v834_v3 }
 0x164   : > { %v930_v13 = vpack.c.bf16 %v906_v35, %v904_v37  ;;  %v910_v59 = vmax.f32 %v878_v41, 0.0  ;;  %v880_v62 = vadd.f32 %v2625_v18, %v2590_v12  ;;  %v882_v47 = vadd.f32 %v2625_v18, %v2593_v9 }
 0x165   : > { %v929_v51 = vpack.c.bf16 %v905_v31, %v903_v29  ;;  %v907_v33 = vmax.f32 %v875_v39, 0.0  ;;  %v909_v26 = vmax.f32 %v877_v44, 0.0  ;;  %v879_v60 = vadd.f32 %v2623_v8, %v2596_v19 }
 0x166   : > { %v932_v0 = vpack.c.bf16 %v910_v59, %v908_v63  ;;  %v912_v38 = vmax.f32 %v880_v62, 0.0  ;;  %v914_v1 = vmax.f32 %v882_v47, 0.0  ;;  %v881_v57 = vadd.f32 %v2623_v8, %v2599_v15 }
 0x167   : > { %v931_v3 = vpack.c.bf16 %v909_v26, %v907_v33  ;;  %v911_v2 = vmax.f32 %v879_v60, 0.0  ;;  %v884_v12 = vadd.f32 %v2625_v18, %v2602_v28  ;;  %v886_v9 = vadd.f32 %v2625_v18, %v2605_v25 }
 0x168   : > { %1108 = vmatmul.mubr.bf16.gmra.mrb[4].mxu1 %v925_v40  ;;  %v934_v4 = vpack.c.bf16 %v914_v1, %v912_v38  ;;  %v913_v6 = vmax.f32 %v881_v57, 0.0  ;;  %v883_v19 = vadd.f32 %v2623_v8, %v2608_v34  ;;  %v885_v7 = vadd.f32 %v2623_v8, %v2611_v52  ;;  %v2193_v40 = vld [vmem:[%s2958_s7 + $0x38] sm:$0xff]  }
 0x169   : > { %1115 = vmatprep.mubr.bf16.mxu1 %v928_v58  ;;  %v916_v10 = vmax.f32 %v884_v12, 0.0  ;;  %v918_v15 = vmax.f32 %v886_v9, 0.0  ;;  %v888_v11 = vadd.f32 %v2625_v18, %v2614_v61  ;;  %v922_v28 = vmax.f32 %v2628_v5, 0.0  ;;  %v2186_v61 = vld [vmem:[%s2958_s7] sm:$0xff]   ;;  %v2191_v5 = vld [vmem:[%s2958_s7 + $0x28] sm:$0xff]  }
 0x16a   : > { %v933_v14 = vpack.c.bf16 %v913_v6, %v911_v2  ;;  %v915_v16 = vmax.f32 %v883_v19, 0.0  ;;  %v917_v25 = vmax.f32 %v885_v7, 0.0  ;;  %v887_v17 = vadd.f32 %v2623_v8, %v2617_v48  ;;  %2066 = vmatprep.subr.bf16.mxu0 %v2186_v61  ;;  %v2187_v48 = vld [vmem:[%s2958_s7 + $0x8] sm:$0xff]   ;;  %v2190_v18 = vld [vmem:[%s2958_s7 + $0x20] sm:$0xff]  }
 0x16b   : > { %v936_v20 = vpack.c.bf16 %v918_v15, %v916_v10  ;;  %v920_v22 = vmax.f32 %v888_v11, 0.0  ;;  %v889_v34 = vadd.f32 %v2623_v8, %v2620_v55  ;;  %2067 = vmatpush3.bf16.msra.mxu0 %v2186_v61  ;;  %v2188_v55 = vld [vmem:[%s2958_s7 + $0x10] sm:$0xff]   ;;  %v2189_v8 = vld [vmem:[%s2958_s7 + $0x18] sm:$0xff]  }
 0x16c   : > { %v935_v52 = vpack.c.bf16 %v917_v25, %v915_v16  ;;  %v919_v23 = vmax.f32 %v887_v17, 0.0  ;;  %2068 = vmatprep.subr.bf16.mxu0 %v2187_v48 }
 0x16d   : > { %v938_v24 = vpack.c.bf16 %v922_v28, %v920_v22  ;;  %v921_v27 = vmax.f32 %v889_v34, 0.0 }
 0x16f   : > { %v937_v32 = vpack.c.bf16 %v921_v27, %v919_v23  ;;  %2069 = vmatpush3.bf16.msra.mxu0 %v2187_v48 }
 0x170   : > { %1116 = vmatmul.mubr.bf16.gmra.mrb[8].mxu1 %v927_v30  ;;  %2070 = vmatprep.subr.bf16.mxu0 %v2188_v55 }
 0x171   : > { %1123 = vmatprep.mubr.bf16.mxu1 %v930_v13 }
 0x173   : > { %2071 = vmatpush3.bf16.msra.mxu0 %v2188_v55 }
 0x174   : > { %2072 = vmatprep.subr.bf16.mxu0 %v2189_v8 }
 0x177   : > { %2073 = vmatpush3.bf16.msra.mxu0 %v2189_v8 }
 0x178   : > { %1124 = vmatmul.mubr.bf16.gmra.mrb[12].mxu1 %v929_v51  ;;  %2074 = vmatprep.subr.bf16.mxu0 %v2190_v18 }
 0x179   : > { %1131 = vmatprep.mubr.bf16.mxu1 %v932_v0 }
 0x17b   : > { %2075 = vmatpush3.bf16.msra.mxu0 %v2190_v18 }
 0x17c   : > { %2076 = vmatprep.subr.bf16.mxu0 %v2191_v5 }
 0x17f   : > { %2077 = vmatpush3.bf16.msra.mxu0 %v2191_v5 }
 0x180   : > { %1132 = vmatmul.mubr.bf16.gmra.mrb[16].mxu1 %v931_v3  ;;  %2078 = vmatprep.subr.bf16.mxu0 %v2192_v36 }
 0x181   : > { %1139 = vmatprep.mubr.bf16.mxu1 %v934_v4 }
 0x183   : > { %2079 = vmatpush3.bf16.msra.mxu0 %v2192_v36 }
 0x184   : > { %2080 = vmatprep.subr.bf16.mxu0 %v2193_v40 }
 0x187   : > { %2081 = vmatpush3.bf16.msra.mxu0 %v2193_v40 }
 0x188   : > { %1140 = vmatmul.mubr.bf16.gmra.mrb[20].mxu1 %v933_v14 }
 0x189   : > { %1147 = vmatprep.mubr.bf16.mxu1 %v936_v20 }
 0x190   : > { %1148 = vmatmul.mubr.bf16.gmra.mrb[24].mxu1 %v935_v52 }
 0x191   : > { %1155 = vmatprep.mubr.bf16.mxu1 %v938_v24 }
 0x198   : > { %1156 = vmatmul.mubr.bf16.gmra.mrb[28].mxu1 %v937_v32 }
 0x233   : > { %v1986_v43 = vpop.f32.mrb[0].mxu1 }
 0x234   : > { %v1987_v46 = vpop.f32.mrb[1].mxu1 }
 0x235   : > { %v2697_v49 = vadd.f32 %v1987_v46, %v1986_v43  ;;  %v1989_v50 = vpop.f32.mrb[2].mxu1 }
 0x236   : > { %v1990_v53 = vpop.f32.mrb[3].mxu1 }
 0x237   : > { %v2699_v54 = vadd.f32 %v1990_v53, %v1989_v50  ;;  %v1187_v29 = vmul.f32 %v2697_v49, %v2697_v49 }
 0x239   : > { %v1188_v35 = vmul.f32 %v2699_v54, %v2699_v54  ;;  %v1166_v41 = vadd.f32 %v2699_v54, %v2697_v49 }
 0x23b   : > { %v1992_v56 = vpop.f32.mrb[4].mxu1  ;;  %v1203_v44 = vadd.f32 %v1188_v35, %v1187_v29 }
 0x23c   : > { %v1993_v58 = vpop.f32.mrb[5].mxu1 }
 0x23d   : > { %v2701_v37 = vadd.f32 %v1993_v58, %v1992_v56  ;;  %v1995_v42 = vpop.f32.mrb[6].mxu1 }
 0x23e   : > { %v1996_v45 = vpop.f32.mrb[7].mxu1 }
 0x23f   : > { %v2703_v30 = vadd.f32 %v1996_v45, %v1995_v42  ;;  %v1189_v31 = vmul.f32 %v2701_v37, %v2701_v37  ;;  %v1167_v13 = vadd.f32 %v2701_v37, %v1166_v41 }
 0x241   : > { %v1204_v51 = vadd.f32 %v1203_v44, %v1189_v31  ;;  %v1190_v33 = vmul.f32 %v2703_v30, %v2703_v30  ;;  %v1168_v60 = vadd.f32 %v2703_v30, %v1167_v13 }
 0x243   : > { %v1998_v63 = vpop.f32.mrb[8].mxu1  ;;  %v1205_v38 = vadd.f32 %v1204_v51, %v1190_v33 }
 0x244   : > { %v1999_v39 = vpop.f32.mrb[9].mxu1 }
 0x245   : > { %v2714_v59 = vadd.f32 %v1999_v39, %v1998_v63  ;;  %v2001_v62 = vpop.f32.mrb[10].mxu1 }
 0x246   : > { %v2002_v47 = vpop.f32.mrb[11].mxu1 }
 0x247   : > { %v2718_v26 = vadd.f32 %v2002_v47, %v2001_v62  ;;  %v1191_v0 = vmul.f32 %v2714_v59, %v2714_v59  ;;  %v1169_v1 = vadd.f32 %v2714_v59, %v1168_v60 }
 0x249   : > { %v1206_v2 = vadd.f32 %v1205_v38, %v1191_v0  ;;  %v1192_v12 = vmul.f32 %v2718_v26, %v2718_v26  ;;  %v1170_v19 = vadd.f32 %v2718_v26, %v1169_v1 }
 0x24b   : > { %v2004_v57 = vpop.f32.mrb[12].mxu1  ;;  %v1207_v15 = vadd.f32 %v1206_v2, %v1192_v12 }
 0x24c   : > { %v2005_v3 = vpop.f32.mrb[13].mxu1 }
 0x24d   : > { %v2726_v9 = vadd.f32 %v2005_v3, %v2004_v57  ;;  %v2007_v4 = vpop.f32.mrb[14].mxu1 }
 0x24e   : > { %v2008_v6 = vpop.f32.mrb[15].mxu1 }
 0x24f   : > { %v1193_v7 = vmul.f32 %v2726_v9, %v2726_v9  ;;  %v2731_v10 = vadd.f32 %v2008_v6, %v2007_v4  ;;  %v1171_v11 = vadd.f32 %v2726_v9, %v1170_v19 }
 0x251   : > { %v1208_v28 = vadd.f32 %v1207_v15, %v1193_v7  ;;  %v1194_v14 = vmul.f32 %v2731_v10, %v2731_v10  ;;  %v1172_v17 = vadd.f32 %v2731_v10, %v1171_v11 }
 0x253   : > { %v2010_v16 = vpop.f32.mrb[16].mxu1  ;;  %v1209_v52 = vadd.f32 %v1208_v28, %v1194_v14 }
 0x254   : > { %v2011_v25 = vpop.f32.mrb[17].mxu1 }
 0x255   : > { %v2737_v20 = vadd.f32 %v2011_v25, %v2010_v16  ;;  %v2013_v22 = vpop.f32.mrb[18].mxu1 }
 0x256   : > { %v2014_v34 = vpop.f32.mrb[19].mxu1 }
 0x257   : > { %v1173_v23 = vadd.f32 %v2737_v20, %v1172_v17  ;;  %v1195_v24 = vmul.f32 %v2737_v20, %v2737_v20  ;;  %v2742_v27 = vadd.f32 %v2014_v34, %v2013_v22 }
 0x259   : > { %v1210_v32 = vadd.f32 %v1209_v52, %v1195_v24  ;;  %v1174_v61 = vadd.f32 %v2742_v27, %v1173_v23  ;;  %v1196_v48 = vmul.f32 %v2742_v27, %v2742_v27 }
 0x25b   : > { %v1211_v55 = vadd.f32 %v1210_v32, %v1196_v48  ;;  %v2016_v8 = vpop.f32.mrb[20].mxu1 }
 0x25c   : > { %v2017_v18 = vpop.f32.mrb[21].mxu1 }
 0x25d   : > { %v2747_v5 = vadd.f32 %v2017_v18, %v2016_v8  ;;  %v2019_v36 = vpop.f32.mrb[22].mxu1  ;;  %v1164_v18 = vld [vmem:[%s2956_s5] sm:$0x1] }
 0x25e   : > { %v2020_v40 = vpop.f32.mrb[23].mxu1 }
 0x25f   : > { %v1175_v43 = vadd.f32 %v2747_v5, %v1174_v61  ;;  %v1197_v46 = vmul.f32 %v2747_v5, %v2747_v5  ;;  %v2752_v50 = vadd.f32 %v2020_v40, %v2019_v36 }
 0x261   : > { %v1212_v53 = vadd.f32 %v1211_v55, %v1197_v46  ;;  %v1176_v56 = vadd.f32 %v2752_v50, %v1175_v43  ;;  %v1198_v58 = vmul.f32 %v2752_v50, %v2752_v50  ;;  %v1165_v43 = vld [vmem:[%s2957_s6] sm:$0x1] }
 0x263   : > { %v1213_v42 = vadd.f32 %v1212_v53, %v1198_v58  ;;  %v2022_v45 = vpop.f32.mrb[24].mxu1 }
 0x264   : > { %v2023_v35 = vpop.f32.mrb[25].mxu1 }
 0x265   : > { %v2024_v29 = vadd.f32 %v2023_v35, %v2022_v45  ;;  %v2025_v41 = vpop.f32.mrb[26].mxu1 }
 0x266   : > { %v2026_v31 = vpop.f32.mrb[27].mxu1 }
 0x267   : > { %v1177_v63 = vadd.f32 %v2024_v29, %v1176_v56  ;;  %v1199_v39 = vmul.f32 %v2024_v29, %v2024_v29  ;;  %v2757_v44 = vadd.f32 %v2026_v31, %v2025_v41 }
 0x269   : > { %v1214_v13 = vadd.f32 %v1213_v42, %v1199_v39  ;;  %v1178_v62 = vadd.f32 %v2757_v44, %v1177_v63  ;;  %v1200_v47 = vmul.f32 %v2757_v44, %v2757_v44 }
 0x26b   : > { %v1215_v51 = vadd.f32 %v1214_v13, %v1200_v47  ;;  %v2028_v33 = vpop.f32.mrb[28].mxu1 }
 0x26c   : > { %v2029_v60 = vpop.f32.mrb[29].mxu1 }
 0x26d   : > { %v2762_v0 = vadd.f32 %v2029_v60, %v2028_v33  ;;  %v2031_v38 = vpop.f32.mrb[30].mxu1 }
 0x26e   : > { %v2032_v1 = vpop.f32.mrb[31].mxu1 }
 0x26f   : > { %v1179_v57 = vadd.f32 %v2762_v0, %v1178_v62  ;;  %v1201_v3 = vmul.f32 %v2762_v0, %v2762_v0  ;;  %v2033_v2 = vadd.f32 %v2032_v1, %v2031_v38 }
 0x271   : > { %v1216_v12 = vadd.f32 %v1215_v51, %v1201_v3  ;;  %v1180_v4 = vadd.f32 %v2033_v2, %v1179_v57  ;;  %v1202_v6 = vmul.f32 %v2033_v2, %v2033_v2 }
 0x273   : > { %v1181_v19 = vrot.slane %v1180_v4, 4  ;;  %v1217_v7 = vadd.f32 %v1216_v12, %v1202_v6 }
 0x275   : > { %v1182_v15 = vadd.f32 %v1181_v19, %v1180_v4  ;;  %v1218_v11 = vrot.slane %v1217_v7, 4 }
 0x277   : > { %v1183_v28 = vrot.slane %v1182_v15, 2  ;;  %v1219_v14 = vadd.f32 %v1218_v11, %v1217_v7 }
 0x279   : > { %v1184_v16 = vadd.f32 %v1183_v28, %v1182_v15  ;;  %v1220_v25 = vrot.slane %v1219_v14, 2 }
 0x27b   : > { %v1185_v17 = vrot.slane %v1184_v16, 1  ;;  %v1221_v22 = vadd.f32 %v1220_v25, %v1219_v14 }
 0x27d   : > { %v1186_v34 = vadd.f32 %v1185_v17, %v1184_v16  ;;  %v1222_v52 = vrot.slane %v1221_v22, 1 }
 0x27f   : > { %v1223_v23 = vadd.f32 %v1222_v52, %v1221_v22  ;;  %v1224_v24 = vmul.f32 0.0078125, %v1186_v34 }
 0x281   : > { %v1225_v32 = vmul.f32 0.0078125, %v1223_v23  ;;  %v1226_v61 = vmul.f32 %v1224_v24, %v1224_v24 }
 0x283   : > { %v1227_v48 = vsub.f32 %v1225_v32, %v1226_v61 }
 0x285   : > { %v1228_v55 = vmax.f32 %v1227_v48, 0.0 }
 0x287   : > { %v1229_v8 = vadd.f32 1e-05, %v1228_v55 }
 0x289   : > { %2206 = vrsqrt.f32 %v1229_v8 }
 0x293   : > { %v2207_v36 = vpop.eup %2206 }
 0x294   : > { %v1231_v40 = vmul.f32 %v2207_v36, %v1164_v18 }
 0x296   : > { %v1232_v46 = vmul.f32 %v1231_v40, %v1224_v24  ;;  %v1238_v53 = vrot.slane %v1231_v40, %v2562_v21 }
 0x298   : > { %v1233_v56 = vsub.f32 %v1165_v43, %v1232_v46  ;;  %v1255_v58 = vmul.f32 %v2033_v2, %v1238_v53  ;;  %v1240_v42 = vmul.f32 %v2697_v49, %v1238_v53  ;;  %v1241_v45 = vmul.f32 %v2699_v54, %v1238_v53  ;;  %v2196_v43 = vld [vmem:[%s2961_s10 + $0x10] sm:$0xff]   ;;  %v2197_v46 = vld [vmem:[%s2961_s10 + $0x18] sm:$0xff]  }
 0x299   : > { %v1242_v35 = vmul.f32 %v2701_v37, %v1238_v53  ;;  %v1243_v41 = vmul.f32 %v2703_v30, %v1238_v53  ;;  %v1244_v31 = vmul.f32 %v2714_v59, %v1238_v53  ;;  %v1245_v63 = vmul.f32 %v2718_v26, %v1238_v53 }
 0x29a   : > { %v1260_v39 = vrot.slane %v1233_v56, %v2562_v21  ;;  %v1246_v13 = vmul.f32 %v2726_v9, %v1238_v53  ;;  %v1247_v62 = vmul.f32 %v2731_v10, %v1238_v53  ;;  %v1248_v47 = vmul.f32 %v2737_v20, %v1238_v53  ;;  %v2199_v56 = vld [vmem:[%s2961_s10 + $0x28] sm:$0xff]  }
 0x29b   : > { %v1249_v49 = vmul.f32 %v2742_v27, %v1238_v53  ;;  %v1250_v54 = vmul.f32 %v2747_v5, %v1238_v53  ;;  %v1251_v37 = vmul.f32 %v2752_v50, %v1238_v53  ;;  %v1252_v51 = vmul.f32 %v2024_v29, %v1238_v53 }
 0x29c   : > { %v1262_v30 = vadd.f32 %v1260_v39, %v1240_v42  ;;  %v1263_v33 = vadd.f32 %v1260_v39, %v1241_v45  ;;  %v1264_v59 = vadd.f32 %v1260_v39, %v1242_v35  ;;  %v1265_v60 = vadd.f32 %v1260_v39, %v1243_v41  ;;  %v2201_v42 = vld [vmem:[%s2961_s10 + $0x38] sm:$0xff]  }
 0x29d   : > { %v1266_v26 = vadd.f32 %v1260_v39, %v1244_v31  ;;  %v1267_v38 = vadd.f32 %v1260_v39, %v1245_v63  ;;  %v1268_v1 = vadd.f32 %v1260_v39, %v1246_v13  ;;  %v1269_v57 = vadd.f32 %v1260_v39, %v1247_v62 }
 0x29e   : > { %v1278_v9 = vmax.f32 %v1262_v30, 0.0  ;;  %v1279_v3 = vmax.f32 %v1263_v33, 0.0  ;;  %v1280_v10 = vmax.f32 %v1264_v59, 0.0  ;;  %v1281_v2 = vmax.f32 %v1265_v60, 0.0 }
 0x29f   : > { %v1282_v20 = vmax.f32 %v1266_v26, 0.0  ;;  %v1283_v12 = vmax.f32 %v1267_v38, 0.0  ;;  %v1284_v27 = vmax.f32 %v1268_v1, 0.0  ;;  %v1285_v4 = vmax.f32 %v1269_v57, 0.0 }
 0x2a0   : > { %v1294_v5 = vpack.c.bf16 %v1279_v3, %v1278_v9  ;;  %v1295_v6 = vpack.c.bf16 %v1281_v2, %v1280_v10  ;;  %v1270_v50 = vadd.f32 %v1260_v39, %v1248_v47  ;;  %v1271_v29 = vadd.f32 %v1260_v39, %v1249_v49 }
 0x2a1   : > { %v1296_v19 = vpack.c.bf16 %v1283_v12, %v1282_v20  ;;  %v1297_v7 = vpack.c.bf16 %v1285_v4, %v1284_v27  ;;  %v1272_v15 = vadd.f32 %v1260_v39, %v1250_v54  ;;  %v1273_v11 = vadd.f32 %v1260_v39, %v1251_v37 }
 0x2a2   : > { %2082 = vmatprep.mubr.bf16.mxu0 %v1294_v5  ;;  %v1286_v28 = vmax.f32 %v1270_v50, 0.0  ;;  %v1287_v14 = vmax.f32 %v1271_v29, 0.0  ;;  %v1253_v16 = vmul.f32 %v2757_v44, %v1238_v53  ;;  %v1274_v25 = vadd.f32 %v1260_v39, %v1252_v51  ;;  %v2194_v44 = vld [vmem:[%s2961_s10] sm:$0xff]  }
 0x2a3   : > { %2083 = vmatmul.mubr.bf16.vlgmr.msra.gmra.mrb[32].mxu0 %v1295_v6  ;;  %v1288_v17 = vmax.f32 %v1272_v15, 0.0  ;;  %v1289_v22 = vmax.f32 %v1273_v11, 0.0  ;;  %v1254_v34 = vmul.f32 %v2762_v0, %v1238_v53  ;;  %v1277_v52 = vadd.f32 %v1260_v39, %v1255_v58  ;;  %2130 = vmatprep.subr.bf16.mxu1 %v2194_v44  ;;  %v2195_v0 = vld [vmem:[%s2961_s10 + $0x8] sm:$0xff]   ;;  %v2198_v53 = vld [vmem:[%s2961_s10 + $0x20] sm:$0xff]   ;;  %v2200_v58 = vld [vmem:[%s2961_s10 + $0x30] sm:$0xff]  }
 0x2a4   : > { %2086 = vmatprep.mubr.bf16.mxu0 %v1296_v19  ;;  %v1298_v23 = vpack.c.bf16 %v1287_v14, %v1286_v28  ;;  %v1275_v24 = vadd.f32 %v1260_v39, %v1253_v16  ;;  %v1290_v32 = vmax.f32 %v1274_v25, 0.0  ;;  %2098 = vmatprep.subr.bf16.mxu0 %v2194_v44 }
 0x2a5   : > { %v1299_v61 = vpack.c.bf16 %v1289_v22, %v1288_v17  ;;  %v1276_v48 = vadd.f32 %v1260_v39, %v1254_v34  ;;  %v1293_v55 = vmax.f32 %v1277_v52, 0.0  ;;  %2138 = vmatpush3.bf16.msra.mxu1 %v2194_v44  ;;  %2099 = vmatpush3.bf16.msra.mxu0 %v2194_v44 }
 0x2a6   : > { %v1291_v8 = vmax.f32 %v1275_v24, 0.0  ;;  %2131 = vmatprep.subr.bf16.mxu1 %v2195_v0  ;;  %2100 = vmatprep.subr.bf16.mxu0 %v2195_v0 }
 0x2a7   : > { %v1292_v18 = vmax.f32 %v1276_v48, 0.0 }
 0x2a8   : > { %v1300_v36 = vpack.c.bf16 %v1291_v8, %v1290_v32 }
 0x2a9   : > { %v1301_v40 = vpack.c.bf16 %v1293_v55, %v1292_v18  ;;  %2139 = vmatpush3.bf16.msra.mxu1 %v2195_v0  ;;  %2101 = vmatpush3.bf16.msra.mxu0 %v2195_v0 }
 0x2aa   : > { %2132 = vmatprep.subr.bf16.mxu1 %v2196_v43  ;;  %2102 = vmatprep.subr.bf16.mxu0 %v2196_v43 }
 0x2ab   : > { %2087 = vmatmul.mubr.bf16.gmra.mrb[36].mxu0 %v1297_v7 }
 0x2ac   : > { %2090 = vmatprep.mubr.bf16.mxu0 %v1298_v23 }
 0x2ad   : > { %2140 = vmatpush3.bf16.msra.mxu1 %v2196_v43  ;;  %2103 = vmatpush3.bf16.msra.mxu0 %v2196_v43 }
 0x2ae   : > { %2133 = vmatprep.subr.bf16.mxu1 %v2197_v46  ;;  %2104 = vmatprep.subr.bf16.mxu0 %v2197_v46 }
 0x2b1   : > { %2141 = vmatpush3.bf16.msra.mxu1 %v2197_v46  ;;  %2105 = vmatpush3.bf16.msra.mxu0 %v2197_v46 }
 0x2b2   : > { %2134 = vmatprep.subr.bf16.mxu1 %v2198_v53  ;;  %2106 = vmatprep.subr.bf16.mxu0 %v2198_v53 }
 0x2b3   : > { %2091 = vmatmul.mubr.bf16.gmra.mrb[40].mxu0 %v1299_v61 }
 0x2b4   : > { %2094 = vmatprep.mubr.bf16.mxu0 %v1300_v36 }
 0x2b5   : > { %2142 = vmatpush3.bf16.msra.mxu1 %v2198_v53  ;;  %2107 = vmatpush3.bf16.msra.mxu0 %v2198_v53 }
 0x2b6   : > { %2135 = vmatprep.subr.bf16.mxu1 %v2199_v56  ;;  %2108 = vmatprep.subr.bf16.mxu0 %v2199_v56 }
 0x2b9   : > { %2143 = vmatpush3.bf16.msra.mxu1 %v2199_v56  ;;  %2109 = vmatpush3.bf16.msra.mxu0 %v2199_v56 }
 0x2ba   : > { %2136 = vmatprep.subr.bf16.mxu1 %v2200_v58  ;;  %2110 = vmatprep.subr.bf16.mxu0 %v2200_v58 }
 0x2bb   : > { %2095 = vmatmul.mubr.bf16.gmra.mrb[44].mxu0 %v1301_v40 }
 0x2bd   : > { %2144 = vmatpush3.bf16.msra.mxu1 %v2200_v58  ;;  %2111 = vmatpush3.bf16.msra.mxu0 %v2200_v58 }
 0x2be   : > { %2137 = vmatprep.subr.bf16.mxu1 %v2201_v42  ;;  %2112 = vmatprep.subr.bf16.mxu0 %v2201_v42 }
 0x2c1   : > { %2145 = vmatpush3.bf16.msra.mxu1 %v2201_v42  ;;  %2113 = vmatpush3.bf16.msra.mxu0 %v2201_v42 }
 0x376   : > { %v2813_v45 = vpop.f32.mrb[32].mxu0 }
 0x377   : > { %v2815_v35 = vpop.f32.mrb[33].mxu0  ;;  %v1488_v62 = vmul.f32 %v2813_v45, %v2813_v45 }
 0x378   : > { %v2817_v41 = vpop.f32.mrb[34].mxu0  ;;  %v1486_v63 = vmul.f32 %v2815_v35, %v2815_v35 }
 0x379   : > { %v2819_v31 = vpop.f32.mrb[35].mxu0  ;;  %v1489_v54 = vmul.f32 %v2817_v41, %v2817_v41 }
 0x37a   : > { %v1465_v39 = vadd.f32 %v2819_v31, %v2815_v35  ;;  %v1487_v13 = vmul.f32 %v2819_v31, %v2819_v31 }
 0x37c   : > { %v1466_v47 = vadd.f32 %v2813_v45, %v1465_v39  ;;  %v1502_v49 = vadd.f32 %v1487_v13, %v1486_v63 }
 0x37e   : > { %v1503_v37 = vadd.f32 %v1502_v49, %v1488_v62  ;;  %v2832_v51 = vpop.f32.mrb[36].mxu0  ;;  %v1467_v30 = vadd.f32 %v2817_v41, %v1466_v47 }
 0x37f   : > { %v2835_v33 = vpop.f32.mrb[37].mxu0  ;;  %v1492_v10 = vmul.f32 %v2832_v51, %v2832_v51 }
 0x380   : > { %v1468_v59 = vadd.f32 %v1467_v30, %v2835_v33  ;;  %v1490_v60 = vmul.f32 %v2835_v33, %v2835_v33  ;;  %v1504_v26 = vadd.f32 %v1503_v37, %v1489_v54  ;;  %v2840_v38 = vpop.f32.mrb[38].mxu0 }
 0x381   : > { %v2842_v1 = vpop.f32.mrb[39].mxu0  ;;  %v1493_v12 = vmul.f32 %v2840_v38, %v2840_v38 }
 0x382   : > { %v1505_v57 = vadd.f32 %v1504_v26, %v1490_v60  ;;  %v1469_v9 = vadd.f32 %v1468_v59, %v2842_v1  ;;  %v1491_v3 = vmul.f32 %v2842_v1, %v2842_v1 }
 0x384   : > { %v1470_v2 = vadd.f32 %v2832_v51, %v1469_v9  ;;  %v1506_v20 = vadd.f32 %v1505_v57, %v1491_v3 }
 0x386   : > { %v1507_v27 = vadd.f32 %v1506_v20, %v1492_v10  ;;  %v2852_v4 = vpop.f32.mrb[40].mxu0  ;;  %v1471_v5 = vadd.f32 %v2840_v38, %v1470_v2  ;;  %v1463_v20 = vld [vmem:[%s2959_s8] sm:$0x1] }
 0x387   : > { %v2855_v6 = vpop.f32.mrb[41].mxu0  ;;  %v1496_v16 = vmul.f32 %v2852_v4, %v2852_v4 }
 0x388   : > { %v1472_v50 = vadd.f32 %v1471_v5, %v2855_v6  ;;  %v1494_v29 = vmul.f32 %v2855_v6, %v2855_v6  ;;  %v1508_v19 = vadd.f32 %v1507_v27, %v1493_v12  ;;  %v2860_v7 = vpop.f32.mrb[42].mxu0  ;;  %v1464_v5 = vld [vmem:[%s2960_s9] sm:$0x1] }
 0x389   : > { %v2862_v15 = vpop.f32.mrb[43].mxu0  ;;  %v1497_v22 = vmul.f32 %v2860_v7, %v2860_v7 }
 0x38a   : > { %v1509_v11 = vadd.f32 %v1508_v19, %v1494_v29  ;;  %v1473_v28 = vadd.f32 %v1472_v50, %v2862_v15  ;;  %v1495_v14 = vmul.f32 %v2862_v15, %v2862_v15 }
 0x38c   : > { %v1474_v25 = vadd.f32 %v2852_v4, %v1473_v28  ;;  %v1510_v17 = vadd.f32 %v1509_v11, %v1495_v14 }
 0x38e   : > { %v1511_v34 = vadd.f32 %v1510_v17, %v1496_v16  ;;  %v2872_v52 = vpop.f32.mrb[44].mxu0  ;;  %v1475_v23 = vadd.f32 %v2860_v7, %v1474_v25 }
 0x38f   : > { %v1448_v24 = vpop.f32.mrb[45].mxu0  ;;  %v1500_v44 = vmul.f32 %v2872_v52, %v2872_v52 }
 0x390   : > { %v1476_v32 = vadd.f32 %v1475_v23, %v1448_v24  ;;  %v1498_v61 = vmul.f32 %v1448_v24, %v1448_v24  ;;  %v1512_v48 = vadd.f32 %v1511_v34, %v1497_v22  ;;  %v2875_v55 = vpop.f32.mrb[46].mxu0 }
 0x391   : > { %v1451_v8 = vpop.f32.mrb[47].mxu0  ;;  %v1501_v46 = vmul.f32 %v2875_v55, %v2875_v55 }
 0x392   : > { %v1513_v18 = vadd.f32 %v1512_v48, %v1498_v61  ;;  %v1477_v36 = vadd.f32 %v1476_v32, %v1451_v8  ;;  %v1499_v40 = vmul.f32 %v1451_v8, %v1451_v8 }
 0x394   : > { %v1478_v0 = vadd.f32 %v2872_v52, %v1477_v36  ;;  %v1514_v43 = vadd.f32 %v1513_v18, %v1499_v40 }
 0x396   : > { %v1479_v53 = vadd.f32 %v2875_v55, %v1478_v0  ;;  %v1515_v56 = vadd.f32 %v1514_v43, %v1500_v44 }
 0x398   : > { %v1480_v58 = vrot.slane %v1479_v53, 4  ;;  %v1516_v42 = vadd.f32 %v1515_v56, %v1501_v46 }
 0x39a   : > { %v1481_v63 = vadd.f32 %v1480_v58, %v1479_v53  ;;  %v1517_v39 = vrot.slane %v1516_v42, 4 }
 0x39c   : > { %v1482_v13 = vrot.slane %v1481_v63, 2  ;;  %v1518_v62 = vadd.f32 %v1517_v39, %v1516_v42 }
 0x39e   : > { %v1483_v47 = vadd.f32 %v1482_v13, %v1481_v63  ;;  %v1519_v49 = vrot.slane %v1518_v62, 2 }
 0x3a0   : > { %v1484_v54 = vrot.slane %v1483_v47, 1  ;;  %v1520_v37 = vadd.f32 %v1519_v49, %v1518_v62 }
 0x3a2   : > { %v1485_v30 = vadd.f32 %v1484_v54, %v1483_v47  ;;  %v1521_v59 = vrot.slane %v1520_v37, 1 }
 0x3a4   : > { %v1522_v60 = vadd.f32 %v1521_v59, %v1520_v37  ;;  %v1523_v26 = vmul.f32 0.0078125, %v1485_v30 }
 0x3a6   : > { %v1524_v57 = vmul.f32 0.0078125, %v1522_v60  ;;  %v1525_v9 = vmul.f32 %v1523_v26, %v1523_v26 }
 0x3a8   : > { %v1526_v3 = vsub.f32 %v1524_v57, %v1525_v9 }
 0x3aa   : > { %v1527_v10 = vmax.f32 %v1526_v3, 0.0 }
 0x3ac   : > { %v1528_v2 = vadd.f32 1e-05, %v1527_v10 }
 0x3ae   : > { %2208 = vrsqrt.f32 %v1528_v2 }
 0x3b8   : > { %v2209_v12 = vpop.eup %2208 }
 0x3b9   : > { %v1530_v27 = vmul.f32 %v2209_v12, %v1463_v20 }
 0x3bb   : > { %v1531_v50 = vmul.f32 %v1530_v27, %v1523_v26  ;;  %v1537_v29 = vrot.slane %v1530_v27, %v2562_v21 }
 0x3bd   : > { %v1532_v19 = vsub.f32 %v1464_v5, %v1531_v50  ;;  %v1552_v11 = vmul.f32 %v1537_v29, %v1451_v8  ;;  %v1539_v28 = vmul.f32 %v1537_v29, %v2815_v35  ;;  %v1540_v14 = vmul.f32 %v1537_v29, %v2819_v31 }
 0x3be   : > { %v1543_v16 = vmul.f32 %v1537_v29, %v2835_v33  ;;  %v1544_v25 = vmul.f32 %v1537_v29, %v2842_v1  ;;  %v1541_v17 = vmul.f32 %v2813_v45, %v1537_v29  ;;  %v1542_v22 = vmul.f32 %v2817_v41, %v1537_v29 }
 0x3bf   : > { %v1559_v34 = vrot.slane %v1532_v19, %v2562_v21  ;;  %v1545_v23 = vmul.f32 %v2832_v51, %v1537_v29  ;;  %v1546_v32 = vmul.f32 %v2840_v38, %v1537_v29  ;;  %v1547_v61 = vmul.f32 %v1537_v29, %v2855_v6 }
 0x3c0   : > { %v1548_v35 = vmul.f32 %v1537_v29, %v2862_v15  ;;  %v1549_v31 = vmul.f32 %v2852_v4, %v1537_v29  ;;  %v1550_v33 = vmul.f32 %v2860_v7, %v1537_v29  ;;  %v1551_v48 = vmul.f32 %v1537_v29, %v1448_v24 }
 0x3c1   : > { %v1574_v1 = vadd.f32 %v1559_v34, %v1552_v11  ;;  %v1561_v8 = vadd.f32 %v1559_v34, %v1539_v28  ;;  %v1562_v45 = vadd.f32 %v1559_v34, %v1540_v14  ;;  %v1565_v18 = vadd.f32 %v1559_v34, %v1543_v16 }
 0x3c2   : > { %v1566_v41 = vadd.f32 %v1559_v34, %v1544_v25  ;;  %v1563_v36 = vadd.f32 %v1559_v34, %v1541_v17  ;;  %v1564_v21 = vadd.f32 %v1559_v34, %v1542_v22  ;;  %v1567_v40 = vadd.f32 %v1559_v34, %v1545_v23 }
 0x3c3   : > { %v1577_v51 = vmax.f32 %v1561_v8, 0.0  ;;  %v1578_v44 = vmax.f32 %v1562_v45, 0.0  ;;  %v1581_v38 = vmax.f32 %v1565_v18, 0.0  ;;  %v1568_v0 = vadd.f32 %v1559_v34, %v1546_v32 }
 0x3c4   : > { %v1582_v6 = vmax.f32 %v1566_v41, 0.0  ;;  %v1579_v43 = vmax.f32 %v1563_v36, 0.0  ;;  %v1580_v15 = vmax.f32 %v1564_v21, 0.0  ;;  %v1583_v46 = vmax.f32 %v1567_v40, 0.0 }
 0x3c5   : > { %v1593_v4 = vpack.c.bf16 %v1578_v44, %v1577_v51  ;;  %v1584_v53 = vmax.f32 %v1568_v0, 0.0  ;;  %v1569_v7 = vadd.f32 %v1559_v34, %v1547_v61  ;;  %v1570_v24 = vadd.f32 %v1559_v34, %v1548_v35 }
 0x3c6   : > { %v1595_v56 = vpack.c.bf16 %v1582_v6, %v1581_v38  ;;  %v1594_v58 = vpack.c.bf16 %v1580_v15, %v1579_v43  ;;  %v1571_v42 = vadd.f32 %v1559_v34, %v1549_v31  ;;  %v1572_v63 = vadd.f32 %v1559_v34, %v1550_v33 }
 0x3c7   : > { %2114 = vmatprep.mubr.bf16.mxu0 %v1593_v4  ;;  %v1596_v39 = vpack.c.bf16 %v1584_v53, %v1583_v46  ;;  %v1585_v13 = vmax.f32 %v1569_v7, 0.0  ;;  %v1586_v62 = vmax.f32 %v1570_v24, 0.0  ;;  %v1573_v47 = vadd.f32 %v1559_v34, %v1551_v48 }
 0x3c8   : > { %2118 = vmatprep.mubr.bf16.mxu1 %v1595_v56  ;;  %2115 = vmatmul.mubr.bf16.vlgmr.msra.gmra.mrb[48].mxu0 %v1594_v58  ;;  %v1587_v49 = vmax.f32 %v1571_v42, 0.0  ;;  %v1588_v54 = vmax.f32 %v1572_v63, 0.0  ;;  %v1590_v37 = vmax.f32 %v1574_v1, 0.0  ;;  %v1553_v30 = vmul.f32 %v2872_v52, %v1537_v29  ;;  %v2908_v52 = vld [vmem:[%s2962_s11] ss:$0 sm:$0xff] }
 0x3c9   : > { %2119 = vmatmul.mubr.bf16.vlgmr.msra.gmra.mrb[32].mxu1 %v1596_v39  ;;  %v1597_v59 = vpack.c.bf16 %v1586_v62, %v1585_v13  ;;  %v1589_v60 = vmax.f32 %v1573_v47, 0.0  ;;  %v1554_v26 = vmul.f32 %v2875_v55, %v1537_v29 }
 0x3ca   : > { %v1598_v57 = vpack.c.bf16 %v1588_v54, %v1587_v49  ;;  %v1575_v9 = vadd.f32 %v1559_v34, %v1553_v30 }
 0x3cb   : > { %2122 = vmatprep.mubr.bf16.mxu1 %v1597_v59  ;;  %v1599_v3 = vpack.c.bf16 %v1590_v37, %v1589_v60  ;;  %v1576_v10 = vadd.f32 %v1559_v34, %v1554_v26 }
 0x3cc   : > { %v1591_v2 = vmax.f32 %v1575_v9, 0.0 }
 0x3cd   : > { %v1592_v20 = vmax.f32 %v1576_v10, 0.0 }
 0x3cf   : > { %v1600_v12 = vpack.c.bf16 %v1592_v20, %v1591_v2 }
 0x3d1   : > { %2123 = vmatmul.mubr.bf16.gmra.mrb[36].mxu1 %v1598_v57 }
 0x3d2   : > { %2126 = vmatprep.mubr.bf16.mxu1 %v1599_v3 }
 0x3d9   : > { %2127 = vmatmul.mubr.bf16.gmra.mrb[40].mxu1 %v1600_v12 }
 0x49b   : > { %v2116_v27 = vpop.f32.mrb[48].mxu0 }
 0x49c   : > { %v1715_v5 = vadd.f32 %v2116_v27, %v2908_v52  ;;  %v2120_v55 = vpop.f32.mrb[32].mxu1  ;;  %v1706_v50 = vpop.f32.mrb[49].mxu0 }
 0x49d   : > { %v1731_v29 = vadd.f32 %v2120_v55, %v2908_v52  ;;  %v1707_v19 = vadd.f32 %v2908_v52, %v1706_v50  ;;  %v1722_v11 = vpop.f32.mrb[33].mxu1  ;;  %v2117_v28 = vpop.f32.mrb[50].mxu0 }
 0x49e   : > { %v1771_v14 = vmul.f32 0.5, %v1715_v5  ;;  %v1723_v16 = vadd.f32 %v2908_v52, %v1722_v11  ;;  %v1718_v25 = vadd.f32 %v2117_v28, %v2908_v52  ;;  %v2121_v17 = vpop.f32.mrb[34].mxu1  ;;  %v1709_v22 = vpop.f32.mrb[51].mxu0 }
 0x49f   : > { %v1775_v34 = vmul.f32 0.5, %v1731_v29  ;;  %v1769_v23 = vmul.f32 0.5, %v1707_v19  ;;  %v1734_v32 = vadd.f32 %v2121_v17, %v2908_v52  ;;  %v1710_v61 = vadd.f32 %v2908_v52, %v1709_v22  ;;  %v1725_v35 = vpop.f32.mrb[35].mxu1 }
 0x4a0   : > { %2210 = vtanh.f32 %v1771_v14  ;;  %v1773_v31 = vmul.f32 0.5, %v1723_v16  ;;  %v1772_v33 = vmul.f32 0.5, %v1718_v25  ;;  %v1726_v48 = vadd.f32 %v2908_v52, %v1725_v35 }
 0x4a1   : > { %2212 = vtanh.f32 %v1775_v34  ;;  %v1776_v1 = vmul.f32 0.5, %v1734_v32  ;;  %v1770_v8 = vmul.f32 0.5, %v1710_v61 }
 0x4a2   : > { %2214 = vtanh.f32 %v1769_v23  ;;  %v1774_v45 = vmul.f32 0.5, %v1726_v48 }
 0x4a3   : > { %2216 = vtanh.f32 %v1773_v31 }
 0x4a4   : > { %2218 = vtanh.f32 %v1772_v33  ;;  %v2124_v18 = vpop.f32.mrb[36].mxu1 }
 0x4a5   : > { %2220 = vtanh.f32 %v1776_v1  ;;  %v1747_v41 = vadd.f32 %v2124_v18, %v2908_v52  ;;  %v1738_v36 = vpop.f32.mrb[37].mxu1 }
 0x4a6   : > { %2222 = vtanh.f32 %v1770_v8  ;;  %v1739_v21 = vadd.f32 %v2908_v52, %v1738_v36  ;;  %v2125_v40 = vpop.f32.mrb[38].mxu1 }
 0x4a7   : > { %2224 = vtanh.f32 %v1774_v45  ;;  %v1779_v51 = vmul.f32 0.5, %v1747_v41  ;;  %v1750_v44 = vadd.f32 %v2125_v40, %v2908_v52  ;;  %v1741_v38 = vpop.f32.mrb[39].mxu1 }
 0x4a8   : > { %v1777_v0 = vmul.f32 0.5, %v1739_v21  ;;  %v1742_v6 = vadd.f32 %v2908_v52, %v1741_v38 }
 0x4a9   : > { %2226 = vtanh.f32 %v1779_v51  ;;  %v1780_v43 = vmul.f32 0.5, %v1750_v44 }
 0x4aa   : > { %v2211_v15 = vpop.eup %2210  ;;  %2228 = vtanh.f32 %v1777_v0  ;;  %v1778_v46 = vmul.f32 0.5, %v1742_v6 }
 0x4ab   : > { %v2213_v4 = vpop.eup %2212  ;;  %v1803_v53 = vmul.f32 0.5, %v2211_v15  ;;  %2230 = vtanh.f32 %v1780_v43 }
 0x4ac   : > { %v2215_v7 = vpop.eup %2214  ;;  %v1807_v24 = vmul.f32 0.5, %v2213_v4  ;;  %2232 = vtanh.f32 %v1778_v46  ;;  %v2128_v56 = vpop.f32.mrb[40].mxu1 }
 0x4ad   : > { %v2217_v58 = vpop.eup %2216  ;;  %v1819_v42 = vadd.f32 0.5, %v1803_v53  ;;  %v1801_v63 = vmul.f32 0.5, %v2215_v7  ;;  %v1763_v39 = vadd.f32 %v2128_v56, %v2908_v52  ;;  %v1754_v13 = vpop.f32.mrb[41].mxu1 }
 0x4ae   : > { %v2219_v62 = vpop.eup %2218  ;;  %v1823_v47 = vadd.f32 0.5, %v1807_v24  ;;  %v1805_v49 = vmul.f32 0.5, %v2217_v58  ;;  %v1755_v54 = vadd.f32 %v2908_v52, %v1754_v13  ;;  %v2129_v37 = vpop.f32.mrb[42].mxu1 }
 0x4af   : > { %v2221_v30 = vpop.eup %2220  ;;  %1835 = vst [vmem:[%s2926_s18 + $0x10] sm:$0xff] %v1819_v42  ;;  %v1817_v59 = vadd.f32 0.5, %v1801_v63  ;;  %v1804_v60 = vmul.f32 0.5, %v2219_v62  ;;  %v1783_v26 = vmul.f32 0.5, %v1763_v39  ;;  %v1766_v57 = vadd.f32 %v2129_v37, %v2908_v52  ;;  %v1757_v9 = vpop.f32.mrb[43].mxu1 }
 0x4b0   : > { %v2223_v3 = vpop.eup %2222  ;;  %1839 = vst [vmem:[%s2926_s18 + $0x30] sm:$0xff] %v1823_v47  ;;  %v1821_v10 = vadd.f32 0.5, %v1805_v49  ;;  %v1808_v2 = vmul.f32 0.5, %v2221_v30  ;;  %v1781_v20 = vmul.f32 0.5, %v1755_v54  ;;  %v1758_v12 = vadd.f32 %v2908_v52, %v1757_v9 }
 0x4b1   : > { %v2225_v27 = vpop.eup %2224  ;;  %1833 = vst [vmem:[%s2926_s18] sm:$0xff] %v1817_v59  ;;  %v1820_v5 = vadd.f32 0.5, %v1804_v60  ;;  %v1802_v55 = vmul.f32 0.5, %v2223_v3  ;;  %2234 = vtanh.f32 %v1783_v26  ;;  %v1784_v50 = vmul.f32 0.5, %v1766_v57 }
 0x4b2   : > { %1837 = vst [vmem:[%s2926_s18 + $0x20] sm:$0xff] %v1821_v10  ;;  %v1824_v29 = vadd.f32 0.5, %v1808_v2  ;;  %v1806_v19 = vmul.f32 0.5, %v2225_v27  ;;  %2236 = vtanh.f32 %v1781_v20  ;;  %v1782_v11 = vmul.f32 0.5, %v1758_v12 }
 0x4b3   : > { %v2227_v28 = vpop.eup %2226  ;;  %1836 = vst [vmem:[%s2926_s18 + $0x18] sm:$0xff] %v1820_v5  ;;  %v1818_v14 = vadd.f32 0.5, %v1802_v55  ;;  %2238 = vtanh.f32 %v1784_v50 }
 0x4b4   : > { %v2229_v52 = vpop.eup %2228  ;;  %1840 = vst [vmem:[%s2926_s18 + $0x38] sm:$0xff] %v1824_v29  ;;  %v1822_v16 = vadd.f32 0.5, %v1806_v19  ;;  %v1811_v25 = vmul.f32 0.5, %v2227_v28  ;;  %2240 = vtanh.f32 %v1782_v11 }
 0x4b5   : > { %v2231_v17 = vpop.eup %2230  ;;  %1834 = vst [vmem:[%s2926_s18 + $0x8] sm:$0xff] %v1818_v14  ;;  %v1809_v22 = vmul.f32 0.5, %v2229_v52 }
 0x4b6   : > { %v2233_v34 = vpop.eup %2232  ;;  %1838 = vst [vmem:[%s2926_s18 + $0x28] sm:$0xff] %v1822_v16  ;;  %v1827_v23 = vadd.f32 0.5, %v1811_v25  ;;  %v1812_v32 = vmul.f32 0.5, %v2231_v17 }
 0x4b7   : > { %v1825_v61 = vadd.f32 0.5, %v1809_v22  ;;  %v1810_v35 = vmul.f32 0.5, %v2233_v34 }
 0x4b8   : > { %1843 = vst [vmem:[%s2926_s18 + $0x50] sm:$0xff] %v1827_v23  ;;  %v1828_v31 = vadd.f32 0.5, %v1812_v32 }
 0x4b9   : > { %1841 = vst [vmem:[%s2926_s18 + $0x40] sm:$0xff] %v1825_v61  ;;  %v1826_v33 = vadd.f32 0.5, %v1810_v35 }
 0x4ba   : > { %1844 = vst [vmem:[%s2926_s18 + $0x58] sm:$0xff] %v1828_v31 }
 0x4bb   : > { %v2235_v48 = vpop.eup %2234  ;;  %1842 = vst [vmem:[%s2926_s18 + $0x48] sm:$0xff] %v1826_v33 }
 0x4bc   : > { %v2237_v1 = vpop.eup %2236  ;;  %v1815_v8 = vmul.f32 0.5, %v2235_v48 }
 0x4bd   : > { %v2239_v45 = vpop.eup %2238  ;;  %v1813_v18 = vmul.f32 0.5, %v2237_v1 }
 0x4be   : > { %v2241_v41 = vpop.eup %2240  ;;  %v1831_v36 = vadd.f32 0.5, %v1815_v8  ;;  %v1816_v21 = vmul.f32 0.5, %v2239_v45 }
 0x4bf   : > { %v1829_v40 = vadd.f32 0.5, %v1813_v18  ;;  %v1814_v51 = vmul.f32 0.5, %v2241_v41 }
 0x4c0   : > { %1847 = vst [vmem:[%s2926_s18 + $0x70] sm:$0xff] %v1831_v36  ;;  %v1832_v44 = vadd.f32 0.5, %v1816_v21 }
 0x4c1   : > { %1845 = vst [vmem:[%s2926_s18 + $0x60] sm:$0xff] %v1829_v40  ;;  %v1830_v38 = vadd.f32 0.5, %v1814_v51 }
 0x4c2   : > { %1848 = vst [vmem:[%s2926_s18 + $0x78] sm:$0xff] %v1832_v44 }
 0x4c3   : > { %1846 = vst [vmem:[%s2926_s18 + $0x68] sm:$0xff] %v1830_v38 }
 0x4c4 PF: > { %s22_s21 = sadd.s32 1, %s2248_s21  }
 0x4c5   : > { %p19_p4 = scmp.ge.s32.totalorder %s22_s21, 6  }
 0x4c7   :  { %21 = sbr.rel (!%p19_p4) target bundleno = 1 (0x1), region = 98 }

</bundles_post_ra>
